<compile_context>
chip_gen: v7x
topology: tpu7x:2x2x1
jax: 0.10.0
libtpu: 0.0.40
codegen_flags: <defaults>
</compile_context>

<pallas_src>
import jax
import jax.numpy as jnp
from jax.experimental import pallas as pl
from jax.experimental.pallas import tpu as pltpu


def _round_up(x: int, m: int) -> int:
    return ((x + m - 1) // m) * m


def _sublane(dtype) -> int:
    return {4: 8, 2: 16, 1: 32}.get(jnp.dtype(dtype).itemsize, 8)


def mm_cat(x1, x2, *, tile_m: int = 512, tile_n: int = 512, tile_k: int = 512):
    """cat([x1 @ x2, x1 @ x2, x1 @ x2], axis=1) as a tiled Pallas TPU kernel."""
    M, K = x1.shape
    K2, N = x2.shape
    assert K == K2, "inner dims must match for mm"
    # Mirror torch.mm type promotion instead of silently taking x1.dtype.
    out_dtype = jnp.promote_types(x1.dtype, x2.dtype)

    # Tiny-shape fallback: padding to (8,128)/(128,128) plus launch overhead
    # dominates; the plain XLA path is strictly faster and simpler.
    if M < 8 or K < 128 or N < 128:
        v1 = jnp.dot(x1, x2, preferred_element_type=jnp.float32).astype(out_dtype)
        return jnp.concatenate([v1, v1, v1], axis=1)

    in1_is = jnp.dtype(x1.dtype).itemsize
    in2_is = jnp.dtype(x2.dtype).itemsize
    out_is = jnp.dtype(out_dtype).itemsize

    # dtype-aware sublane alignment for the M (second-minor) dimension.
    sub = max(_sublane(x1.dtype), _sublane(out_dtype))

    # ---- tile selection -----------------------------------------------------
    tm = min(tile_m, _round_up(M, sub))

    tk = min(tile_k, _round_up(K, 128))
    Kp = _round_up(K, tk)
    nbk = Kp // tk

    if N % 128 == 0:
        # Exact tiling of N: concat copies land on block boundaries, no output
        # padding / slicing epilogue needed.
        if N <= tile_n:
            tn = N
        else:
            tn = next(t for t in (tile_n, 384, 256, 128) if N % t == 0)
        Np = N
    else:
        # Lane padding required; output comes out as (M, 3*Np), sliced at the end.
        tn = min(tile_n, _round_up(N, 128))
        Np = _round_up(N, tn)
    nbj = Np // tn
    nbi = pl.cdiv(M, tm)

    # ---- padding ------------------------------------------------------------
    # Only K needs explicit zero padding (garbage there would corrupt valid
    # results).  M / N edge blocks are masked by Pallas: garbage only flows
    # into output rows >= M (dropped by masked stores) or output columns that
    # the epilogue slices away.
    if Kp != K:
        x1 = jnp.pad(x1, ((0, 0), (0, Kp - K)))
        x2 = jnp.pad(x2, ((0, Kp - K), (0, 0)))

    # ---- kernel -------------------------------------------------------------
    def kernel(x1_ref, x2_ref, o_ref, acc_ref):
        kc = pl.program_id(2)  # 0..nbk-1: accumulate; nbk, nbk+1: re-store copies

        @pl.when(kc == 0)
        def _():
            acc_ref[...] = jnp.zeros_like(acc_ref)

        @pl.when(kc < nbk)
        def _():
            acc_ref[...] += jnp.dot(
                x1_ref[...], x2_ref[...], preferred_element_type=jnp.float32
            )

        # Write only on the final visit of each output block (last K step for
        # copy 0, the single visit for copies 1 and 2).  Lane-dense full-tile
        # stores; the concat re-stores do no compute and no input DMA.
        @pl.when(kc >= nbk - 1)
        def _():
            o_ref[...] = acc_ref[...].astype(o_ref.dtype)

    # Input blocks clamp to the last K block during the two copy steps, so the
    # K strips are not re-streamed across the concat axis.
    def x1_map(i, j, kc):
        return (i, jnp.minimum(kc, nbk - 1))

    def x2_map(i, j, kc):
        return (jnp.minimum(kc, nbk - 1), j)

    def out_map(i, j, kc):
        copy = jnp.maximum(kc - (nbk - 1), 0)  # 0, 0, ..., 0, 1, 2
        return (i, copy * nbj + j)

    grid_spec = pltpu.PrefetchScalarGridSpec(
        num_scalar_prefetch=0,
        grid=(nbi, nbj, nbk + 2),
        in_specs=[
            pl.BlockSpec((tm, tk), x1_map),
            pl.BlockSpec((tk, tn), x2_map),
        ],
        out_specs=pl.BlockSpec((tm, tn), out_map),
        scratch_shapes=[pltpu.VMEM((tm, tn), jnp.float32)],
    )
    # TODO(synk): optionally bump output pipelining depth (pipeline_mode=
    # pl.Buffered(3)) to better overlap the three back-to-back concat stores.

    # VMEM budget from the actual double-buffered blocks (keeps us well under
    # v7x's 64 MiB physical VMEM as well as v5e/v6e scoped defaults).
    vmem_needed = (
        2 * (tm * tk * in1_is + tk * tn * in2_is)  # double-buffered inputs
        + 2 * tm * tn * out_is                     # double-buffered output
        + tm * tn * 4                              # f32 accumulator
    )
    vmem_limit = min(max(2 * vmem_needed, 32 << 20), 48 << 20)

    cost = pl.CostEstimate(
        flops=2 * M * N * K,
        transcendentals=0,
        bytes_accessed=M * K * in1_is + K * N * in2_is + 3 * M * N * out_is,
    )

    out_p = pl.pallas_call(
        kernel,
        out_shape=jax.ShapeDtypeStruct((M, 3 * Np), out_dtype),
        grid_spec=grid_spec,
        compiler_params=pltpu.CompilerParams(
            dimension_semantics=("parallel", "parallel", "arbitrary"),
            vmem_limit_bytes=vmem_limit,
        ),
        cost_estimate=cost,
    )(x1, x2)

    if Np == N:
        return out_p
    # Strip N padding: (M, 3*Np) -> (M, 3, Np) -> slice -> (M, 3*N).
    return out_p.reshape(M, 3, Np)[:, :, :N].reshape(M, 3 * N)


def _ref(x1, x2, out_dtype=None):
    v1 = jnp.dot(x1, x2, preferred_element_type=jnp.float32)
    if out_dtype is not None:
        v1 = v1.astype(out_dtype)
    return jnp.concatenate([v1, v1, v1], axis=1)


if __name__ == "__main__":
    key = jax.random.PRNGKey(0)
    k1, k2, k3, k4, k5, k6 = jax.random.split(key, 6)

    # 1) Small shapes consistent with the module's forward (mm-compatible):
    #    x1=(2,4), x2=(4,8) -> mm -> (2,8) -> cat(dim=1) -> (2,24).  Fallback path.
    x1 = jax.random.normal(k1, (2, 4), dtype=jnp.float32)
    x2 = jax.random.normal(k2, (4, 8), dtype=jnp.float32)
    out = jax.block_until_ready(mm_cat(x1, x2))
    assert out.shape == (2, 24), out.shape
    assert jnp.allclose(out, _ref(x1, x2), rtol=1e-3, atol=1e-3), "small-shape mismatch"

    # 2) Exact-tiling kernel path: multi-j, single K block, no padding anywhere.
    x1b = jax.random.normal(k3, (256, 384), dtype=jnp.float32)
    x2b = jax.random.normal(k4, (384, 768), dtype=jnp.float32)
    outb = jax.block_until_ready(mm_cat(x1b, x2b))
    assert outb.shape == (256, 3 * 768), outb.shape
    assert jnp.allclose(outb, _ref(x1b, x2b), rtol=1e-3, atol=1e-3), "exact-tiling mismatch"

    # 3) General kernel path: K tiling + K zero-pad, partial M block (masked
    #    writes), partial N block (garbage sliced away by the epilogue).
    x1c = jax.random.normal(k5, (300, 700), dtype=jnp.float32)
    x2c = jax.random.normal(k6, (700, 200), dtype=jnp.float32)
    outc = jax.block_until_ready(mm_cat(x1c, x2c))
    assert outc.shape == (300, 600), outc.shape
    assert jnp.allclose(outc, _ref(x1c, x2c), rtol=1e-3, atol=1e-3), "padded-path mismatch"

    print("KERNEL_OK")
</pallas_src>

<mosaic_0001>
module attributes {stable_mosaic.version = 11 : i64} {
  func.func @kernel(%arg0: i32, %arg1: i32, %arg2: i32, %arg3: memref<256x384xf32, #tpu.memory_space<vmem>>, %arg4: memref<384x384xf32, #tpu.memory_space<vmem>>, %arg5: memref<256x384xf32, #tpu.memory_space<vmem>>, %arg6: memref<256x384xf32, #tpu.memory_space<vmem>>) attributes {dimension_semantics = [#tpu.dimension_semantics<parallel>, #tpu.dimension_semantics<parallel>, #tpu.dimension_semantics<arbitrary>], iteration_bounds = array<i64: 1, 2, 3>, scalar_prefetch = 0 : i64, scratch_operands = 1 : i64, tpu.core_type = #tpu.core_type<tc>, window_params = [{transform_indices = @transform_0, window_bounds = array<i64: 256, 384>}, {transform_indices = @transform_1, window_bounds = array<i64: 384, 384>}, {transform_indices = @transform_2, window_bounds = array<i64: 256, 384>}]} {
    %c0_i32 = arith.constant 0 : i32
    %0 = arith.cmpi eq, %arg2, %c0_i32 : i32
    %1 = arith.extui %0 : i1 to i32
    %c0_i32_0 = arith.constant 0 : i32
    %2 = arith.cmpi ne, %1, %c0_i32_0 : i32
    scf.if %2 {
      %cst = arith.constant 0.000000e+00 : f32
      %9 = vector.broadcast %cst : f32 to vector<256x384xf32>
      %c0 = arith.constant 0 : index
      %c0_4 = arith.constant 0 : index
      %10 = vector.load %arg6[%c0, %c0_4] : memref<256x384xf32, #tpu.memory_space<vmem>>, vector<256x384xf32>
      tpu.vector_store %arg6[%c0, %c0_4], %9 {strides = array<i32>} : memref<256x384xf32, #tpu.memory_space<vmem>>, vector<256x384xf32>,
    } else {
    }
    %c1_i32 = arith.constant 1 : i32
    %3 = arith.cmpi slt, %arg2, %c1_i32 : i32
    %4 = arith.extui %3 : i1 to i32
    %c0_i32_1 = arith.constant 0 : i32
    %5 = arith.cmpi ne, %4, %c0_i32_1 : i32
    scf.if %5 {
      %c0 = arith.constant 0 : index
      %c0_4 = arith.constant 0 : index
      %9 = vector.load %arg6[%c0, %c0_4] : memref<256x384xf32, #tpu.memory_space<vmem>>, vector<256x384xf32>
      %c0_5 = arith.constant 0 : index
      %c0_6 = arith.constant 0 : index
      %10 = vector.load %arg3[%c0_5, %c0_6] : memref<256x384xf32, #tpu.memory_space<vmem>>, vector<256x384xf32>
      %c0_7 = arith.constant 0 : index
      %c0_8 = arith.constant 0 : index
      %11 = vector.load %arg4[%c0_7, %c0_8] : memref<384x384xf32, #tpu.memory_space<vmem>>, vector<384x384xf32>
      %cst = arith.constant dense<0.000000e+00> : vector<256x384xf32>
      %12 = tpu.matmul %10, %11, %cst {dimension_numbers = #tpu.dot_dimension_numbers<[1], [0], [0], [1], [0, 0, 1, 1], [], []>} : vector<256x384xf32>, vector<384x384xf32>, vector<256x384xf32> -> vector<256x384xf32>
      %13 = arith.addf %9, %12 : vector<256x384xf32>
      %c0_9 = arith.constant 0 : index
      %c0_10 = arith.constant 0 : index
      %14 = vector.load %arg6[%c0_9, %c0_10] : memref<256x384xf32, #tpu.memory_space<vmem>>, vector<256x384xf32>
      tpu.vector_store %arg6[%c0_9, %c0_10], %13 {strides = array<i32>} : memref<256x384xf32, #tpu.memory_space<vmem>>, vector<256x384xf32>,
    } else {
    }
    %c0_i32_2 = arith.constant 0 : i32
    %6 = arith.cmpi sge, %arg2, %c0_i32_2 : i32
    %7 = arith.extui %6 : i1 to i32
    %c0_i32_3 = arith.constant 0 : i32
    %8 = arith.cmpi ne, %7, %c0_i32_3 : i32
    scf.if %8 {
      %c0 = arith.constant 0 : index
      %c0_4 = arith.constant 0 : index
      %9 = vector.load %arg6[%c0, %c0_4] : memref<256x384xf32, #tpu.memory_space<vmem>>, vector<256x384xf32>
      %c0_5 = arith.constant 0 : index
      %c0_6 = arith.constant 0 : index
      %10 = vector.load %arg5[%c0_5, %c0_6] : memref<256x384xf32, #tpu.memory_space<vmem>>, vector<256x384xf32>
      tpu.vector_store %arg5[%c0_5, %c0_6], %9 {strides = array<i32>} : memref<256x384xf32, #tpu.memory_space<vmem>>, vector<256x384xf32>,
    } else {
    }
    return
  }
  func.func @transform_0(%arg0: i32, %arg1: i32, %arg2: i32) -> (i32, i32) {
    %c0_i32 = arith.constant 0 : i32
    %0 = arith.minsi %arg2, %c0_i32 : i32
    %c0_i32_0 = arith.constant 0 : i32
    return %arg0, %0 : i32, i32
  }
  func.func @transform_1(%arg0: i32, %arg1: i32, %arg2: i32) -> (i32, i32) {
    %c0_i32 = arith.constant 0 : i32
    %0 = arith.minsi %arg2, %c0_i32 : i32
    %c0_i32_0 = arith.constant 0 : i32
    return %0, %arg1 : i32, i32
  }
  func.func @transform_2(%arg0: i32, %arg1: i32, %arg2: i32) -> (i32, i32) {
    %c0_i32 = arith.constant 0 : i32
    %0 = arith.subi %arg2, %c0_i32 : i32
    %c0_i32_0 = arith.constant 0 : i32
    %1 = arith.maxsi %0, %c0_i32_0 : i32
    %c2_i32 = arith.constant 2 : i32
    %2 = arith.muli %1, %c2_i32 : i32
    %3 = arith.addi %2, %arg1 : i32
    %c0_i32_1 = arith.constant 0 : i32
    return %arg0, %3 : i32, i32
  }
}

</mosaic_0001>

<bundles_post_ra>
// kernel: tpu_custom_call.1
= control target key start
LH: loop header
LB: loop body
LE: loop exit
PB: predicated region body
PF: predicated region fallthrough
CT: control target
= control target key end

     0   :  { %s3876_s0 = inlined_call_operand.hbm [shape: f32[256,384], index: 0, kind: input, shape index: {}]   ;;  %s3877_s1 = inlined_call_operand.hbm [shape: f32[384,768], index: 1, kind: input, shape index: {}]   ;;  %s3878_s2 = inlined_call_operand.hbm [shape: f32[256,2304], index: 2, kind: output, shape index: {}]  }
   0x1   :  { %3900 = sst [smem:[#allocation20_spill]] %s3876_s0 }
   0x2   :  { %3901 = sst [smem:[#allocation21_spill]] %s3878_s2 }
   0x3   :  { %7 = vsyncpa [#allocation4], 0 }
   0x4   :  { %9 = vsyncpa [#allocation4 + $0x1], 0 }
   0x5   :  { %10 = vsyncpa [#allocation7], 0 }
   0x6   :  { %12 = vsyncpa [#allocation7 + $0x1], 0 }
   0x7   :  { %13 = vsyncpa [#allocation5], 0 }
   0x8   :  { %15 = vsyncpa [#allocation5 + $0x1], 0  ;;  %s2971_s9 = smov 0   ;;  %s2973_s10 = smov 0  }
   0x9   :  { %s2975_s11 = smov 0   ;;  %s2977_s12 = smov 0  }
   0xa   :  { %s2979_s13 = smov 0   ;;  %s2981_s14 = smov 0  }
   0xb   :  { %s2983_s15 = smov 0   ;;  %s2985_s16 = smov 0  }
   0xc   :  { %s2987_s17 = smov 0   ;;  %s2989_s18 = smov 0  }
   0xd   :  { %s2991_s19 = smov 0   ;;  %s2993_s20 = smov 0  }
   0xe   :  { %s2995_s21 = smov 0  }
   0xf LB: > { %3902 = sst [smem:[#allocation12_spill]] %s2894_s9  ;;  %s2201_s22 = sadd.s32 4294967295, %s2942_s21   ;;  %s2942_s21 = sphi %s2995_s21, %s21_s21   ;;  %s2938_s20 = sphi %s2993_s20, %s3957_s20   ;;  %s2934_s19 = sphi %s2991_s19, %s3956_s19   ;;  %s2930_s18 = sphi %s2989_s18, %s3955_s18   ;;  %s2926_s17 = sphi %s2987_s17, %s3954_s17   ;;  %s2922_s16 = sphi %s2985_s16, %s3858_s16   ;;  %s2918_s15 = sphi %s2983_s15, %s3953_s15   ;;  %s2914_s14 = sphi %s2981_s14, %s3952_s14   ;;  %s2910_s13 = sphi %s2979_s13, %s3951_s13   ;;  %s2906_s12 = sphi %s2977_s12, %s3948_s12   ;;  %s2902_s11 = sphi %s2975_s11, %s3950_s11   ;;  %s2898_s10 = sphi %s2973_s10, %s3949_s10   ;;  %s2894_s9 = sphi %s2971_s9, %s3947_s9  }
  0x10   : > { %3903 = sst [smem:[#allocation13_spill]] %s2898_s10  ;;  %s33_s23 = sadd.s32 1, %s2934_s19 }
  0x11   : > { %3904 = sst [smem:[#allocation14_spill]] %s2910_s13  ;;  %s2202_s24 = sadd.s32 4294967294, %s2942_s21  }
  0x12   : > { %3905 = sst [smem:[#allocation15_spill]] %s2926_s17  ;;  %p3037_p0 = scmp.ge.s32.totalorder %s33_s23, 3 }
  0x13   : > { %3906 = sst [smem:[#allocation16_spill]] %s2930_s18  ;;  %p2891_p1 = scmp.ne.s32.totalorder %s2922_s16, 0 }
  0x14   : > { %s3907_s25 = scalar_select %p3037_p0, 1, 0 }
  0x15   : > { %s3959_s23 = smov (%p3037_p0, %s33_s23), 0  ;;  %p3881_p2 = scmp.eq.s32.totalorder %s2942_s21, 0 }
  0x16   : > { %p66_p3 = scmp.ne.s32.totalorder %s2922_s16, %s2918_s15  ;;  %p3048_p4 = scmp.eq.s32.totalorder %s2201_s22, 0 }
  0x17   : > { %p62_p5 = por %p2891_p1, %p3881_p2  ;;  %p131_p8 = scmp.ne.s32.totalorder %s2902_s11, %s2898_s10 }
  0x18   : > { %s3908_s26 = scalar_select %p3048_p4, 1, 0 }
  0x19   : > { %p3056_p6 = por %p3048_p4, %p66_p3  ;;  %p132_p9 = scmp.eq.s32.totalorder %s2201_s22, 5 }
  0x1a   : > { %p137_p10 = scmp.ne.s32.totalorder %s2898_s10, %s2894_s9  ;;  %p138_p12 = scmp.eq.s32.totalorder %s2202_s24, 5 }
  0x1b   : > { %s3909_s27 = scalar_select %p3056_p6, 1, 0 }
  0x1c   : > { %p3065_p11 = por %p132_p9, %p131_p8  ;;  %p3880_p13 = scmp.lt.s32.totalorder %s2942_s21, 6 }
  0x1d   : > { %p3070_p0 = por %p138_p12, %p137_p10  ;;  %s2944_s3 = smov [#allocation3]  }
  0x1e   : > { %s3910_s28 = scalar_select %p3065_p11, 1, 0 }
  0x1f   : > { %s3912_s29 = scalar_select %p3070_p0, 1, 0 }
  0x20   : > { %3911 = sst [smem:[#allocation17_spill]] %s3910_s28  ;;  %p3076_p1 = pnand %p3880_p13, %p62_p5 }
  0x21   : > { %3913 = sst [smem:[#allocation18_spill]] %s3912_s29  ;;  %s174_s4 = sshll.u32 %s2944_s3, 4  ;;  %s175_s4 = int_to_ptr.vmem [resolvable:$true] %s174_s4 }
  0x22   : > { %s3914_s30 = scalar_select %p3076_p1, 1, 0 }
  0x23   : > { %s3915_s0 = sld [smem:[#allocation20_spill]]  ;;  %p2736_p8 = pneg %p3076_p1 }
  0x29   : > { %s2734_s7 = scalar_lea.hbm %s3915_s0, 12288 }
  0x2a   : > { %p2735_p3 = scmp.ne.s32.totalorder %s3915_s0, %s2734_s7  ;;  %p2741_p5 = scmp.lt.u32.totalorder %s2734_s7, %s2734_s7 }
  0x2b   : > { %p2743_p12 = scmp.lt.u32.totalorder %s2734_s7, %s3915_s0 }
  0x2c   : > { %p2737_p9 = pnand %p2736_p8, %p2735_p3 }
  0x2d   : > { %p2744_p13 = por %p2743_p12, %p2741_p5 }
  0x2e   : > { %p2738_p10 = pneg %p2737_p9 }
  0x30   : > { %p2745_p7 = pnand %p2744_p13, %p2738_p10 }
  0x32   : > { %2748 = shalt.err (!%p2745_p7)
}
  0x33   : > { %s2749_s3 = scalar_lea.vmem %s175_s4, 12288  ;;  %s2756_s5 = scalar_lea.vmem %s175_s4, 24576 }
  0x34   : > { %p2750_p2 = scmp.ne.s32.totalorder %s175_s4, %s2749_s3  ;;  %p2757_p6 = scmp.lt.s32.totalorder %s175_s4, %s175_s4 }
  0x35   : > { %p2758_p4 = scmp.lt.s32.totalorder %s2756_s5, %s2749_s3 }
  0x36   : > { %p2752_p0 = pnand %p2750_p2, %p2736_p8 }
  0x37   : > { %p2759_p1 = por %p2758_p4, %p2757_p6 }
  0x38   : > { %p2753_p11 = pneg %p2752_p0 }
  0x3a   : > { %p2760_p3 = pnand %p2759_p1, %p2753_p11 }
  0x3c   : > { %2763 = shalt.err (!%p2760_p3)
}
  0x3d   : > { %s3886_s6 = smov 384   ;;  %s3887_s7 = smov 24  }
  0x3e   : > { %p3916_p0 = scmp.ne.s32.totalorder %s3914_s30, 0  ;;  %p2209_p2 = scmp.ge.s32.totalorder %s2942_s21, 1 }
  0x3f   : > { %p208_p4 = scmp.lt.s32.totalorder %s2942_s21, 7  ;;  %s36_s24 = sadd.s32 1, %s2938_s20 }
  0x40   : > { %2602 = dma.hbm_to_vmem [thread:$0]  (!%p3916_p0), %s3915_s0, 12288, %s175_s4, [#allocation4], %s3886_s6, %s3886_s6, %s3887_s7  }
  0x41   : > { %p3101_p6 = pnand %p2209_p2, %p208_p4  ;;  %p3918_p7 = scmp.ne.s32.totalorder %s3907_s25, 0 }
  0x42   : > { %s121_s30 = sadd.s32 1, %s2902_s11  ;;  %p92_p11 = scmp.ne.s32.totalorder %s2914_s14, %s2910_s13 }
  0x43   : > { %s3961_s24 = smov (!%p3918_p7, %s36_s24), %s2938_s20  ;;  %p98_p1 = scmp.ne.s32.totalorder %s2910_s13, %s2906_s12 }
  0x44   : > { %p38_p13 = scmp.ge.s32.totalorder %s3961_s24, 2  ;;  %s85_s4 = sadd.s32 1, %s2914_s14 }
  0x45   : > { %p3919_p8 = scmp.eq.s32.totalorder %s2942_s21, 0  ;;  %p3921_p10 = scmp.ne.s32.totalorder %s3908_s26, 0 }
  0x46   : > { %s3963_s24 = smov (%p38_p13, %s3961_s24), 0  ;;  %s184_s5 = sand.u32 1, %s2914_s14  }
  0x47   : > { %p3117_p9 = por %p92_p11, %p3919_p8  ;;  %p3125_p5 = por %p98_p1, %p3921_p10 }
  0x48   : > { %s81_s8 = ssub.s32 %s2938_s20, %s3963_s24  ;;  %p112_p12 = scmp.gt.s32.totalorder %s3959_s23, 0 }
  0x49   : > { %s3922_s25 = scalar_select %p3125_p5, 1, 0 }
  0x4a   : > { %s2588_s12 = smul.u32 1152, %s184_s5  ;;  %p83_p3 = scmp.eq.s32.totalorder %s81_s8, 0 }
  0x4b   : > { %3923 = sst [smem:[#allocation19_spill]] %s3922_s25  ;;  %p3924_p0 = scmp.gt.s32.totalorder %s2934_s19, 0 }
  0x4c   : > { %s3137_s6 = scalar_select %p83_p3, %s2914_s14, %s85_s4  }
  0x4d   : > { %s109_s15 = scalar_select %p3924_p0, %s2934_s19, 0 }
  0x4e   : > { %s113_s26 = scalar_select %p112_p12, %s3959_s23, 0 }
  0x4f   : > { %s2203_s7 = sshll.u32 %s109_s15, 1  ;;  %s2890_s9 = smul.u32 384, %s2938_s20 }
  0x50   : > { %s111_s0 = sadd.s32 %s2938_s20, %s2203_s7  ;;  %s2204_s29 = sshll.u32 %s113_s26, 1 }
  0x51   : > { %s115_s2 = sadd.s32 %s2204_s29, %s3963_s24  ;;  %s188_s28 = scalar_lea.vmem [#allocation6], %s2588_s12 }
  0x52   : > { %s200_s18 = sshll.u32 %s188_s28, 4  ;;  %s117_s17 = ssub.s32 %s111_s0, %s115_s2  ;;  %s3156_s18 = int_to_ptr.vmem [resolvable:$true] %s200_s18 }
  0x53   : > { %s3146_s13 = scalar_lea.hbm %s3877_s1, %s2890_s9  ;;  %p119_p2 = scmp.eq.s32.totalorder %s117_s17, 0 }
  0x54   : > { %p3925_p4 = scmp.lt.s32.totalorder %s2942_s21, 6  ;;  %s3161_s2 = scalar_lea.sflag [#allocation7], %s184_s5 }
  0x55   : > { %s3159_s0 = scalar_select %p119_p2, %s2902_s11, %s121_s30  }
  0x56   : > { %p3152_p7 = pnand %p3925_p4, %p3117_p9  ;;  %s2764_s9 = scalar_lea.hbm %s3146_s13, 18432 }
  0x57   : > { %p2765_p11 = scmp.ne.s32.totalorder %s3146_s13, %s2764_s9  ;;  %s2769_s28 = scalar_lea.hbm %s3877_s1, 36864 }
  0x58   : > { %p2766_p13 = pneg %p3152_p7  ;;  %p2770_p9 = scmp.lt.u32.totalorder %s3146_s13, %s3877_s1 }
  0x59   : > { %p2771_p10 = scmp.lt.u32.totalorder %s2769_s28, %s2764_s9  ;;  %p2773_p3 = scmp.lt.u32.totalorder %s2764_s9, %s3146_s13 }
  0x5a   : > { %p2767_p1 = pnand %p2766_p13, %p2765_p11 }
  0x5b   : > { %p2772_p12 = por %p2771_p10, %p2770_p9 }
  0x5c   : > { %p2768_p8 = pneg %p2767_p1 }
  0x5d   : > { %p2774_p0 = por %p2773_p3, %p2772_p12 }
  0x5f   : > { %p2775_p2 = pnand %p2774_p0, %p2768_p8 }
  0x61   : > { %2778 = shalt.err (!%p2775_p2)
}
  0x62   : > { %s2779_s30 = scalar_lea.vmem %s3156_s18, 18432  ;;  %s2947_s3 = smov [#allocation6]  }
  0x63   : > { %p2780_p4 = scmp.ne.s32.totalorder %s3156_s18, %s2779_s30  ;;  %s2784_s25 = sshll.u32 %s2947_s3, 4  ;;  %s2785_s25 = int_to_ptr.vmem [resolvable:$false] %s2784_s25 }
  0x64   : > { %s2786_s5 = scalar_lea.vmem %s2785_s25, 36864  ;;  %p2787_p5 = scmp.lt.s32.totalorder %s3156_s18, %s2785_s25 }
  0x65   : > { %p2782_p11 = pnand %p2780_p4, %p2766_p13  ;;  %p2788_p9 = scmp.lt.s32.totalorder %s2786_s5, %s2779_s30 }
  0x67   : > { %p2783_p1 = pneg %p2782_p11  ;;  %p2789_p10 = por %p2788_p9, %p2787_p5 }
  0x69   : > { %p2790_p12 = pnand %p2789_p10, %p2783_p1 }
  0x6b   : > { %2793 = shalt.err (!%p2790_p12)
}
  0x6c   : > { %s2948_s8 = smov 768   ;;  %s3927_s12 = smov 24  }
  0x6d   : > { %s3928_s15 = smov 384   ;;  %212 = sbr.rel (%p3101_p6) target bundleno = 812 (0x32c), region = 28 }
  0x6e   : > { %2605 = dma.hbm_to_vmem [thread:$0]  (!%p3152_p7), %s3146_s13, 18432, %s3156_s18, %s3161_s2, %s2948_s8, %s3928_s15, %s3927_s12  }
  0x6f   : > { %s214_s26 = sand.u32 (!%p3101_p6), 1, %s2922_s16   ;;  %p3929_p5 = scmp.ne.s32.totalorder (!%p3101_p6), %s3909_s27, 0 }
  0x70   : > { %s2590_s9 = smul.u32 (!%p3101_p6), 768, %s214_s26  ;;  %s215_s10 = scalar_lea.sflag (!%p3101_p6), [#allocation4], %s214_s26 }
  0x72   : > { %s3194_s17 = scalar_lea.vmem (!%p3101_p6), [#allocation3], %s2590_s9 }
  0x74   : > { %2879 = dma.done.wait (%p3929_p5), %s215_s10, 12288  }
  0x75   : > { %2881 = vsyncadd (%p3929_p5), %s215_s10, 4294955008  ;;  %s3930_s7 = sld [smem:[#allocation14_spill]]  ;;  %s3931_s28 = sld [smem:[#allocation19_spill]] }
  0x7b   : > { %s223_s29 = sand.u32 1, %s3930_s7   ;;  %p3932_p6 = scmp.ne.s32.totalorder %s3931_s28, 0 }
  0x7c   : > { %s2591_s4 = smul.u32 1152, %s223_s29  ;;  %s224_s13 = scalar_lea.sflag [#allocation7], %s223_s29 }
  0x7e   : > { %s3201_s18 = scalar_lea.vmem [#allocation6], %s2591_s4 }
  0x7f   : > { %2883 = dma.done.wait (%p3932_p6), %s224_s13, 18432  }
  0x80   : > { %2885 = vsyncadd (%p3932_p6), %s224_s13, 4294948864  ;;  %s3933_s22 = sld [smem:[#allocation13_spill]]  ;;  %s3934_s27 = sld [smem:[#allocation15_spill]] }
  0x86   : > { %s250_s2 = sand.u32 1, %s3933_s22   ;;  %p2210_p7 = scmp.ne.s32.totalorder %s3934_s27, 0 }
  0x87   : > { %s2592_s30 = smul.u32 768, %s250_s2  ;;  %v2949_v0 = vmov (!%p2210_p7), 0.0  }
  0x88   : > { %270 = sbr.rel (%p2210_p7) target bundleno = 184 (0xb8), region = 40  ;;  %271 = vst [vmem:[#allocation2] sm:$0xff] (!%p2210_p7), %v2949_v0  ;;  %272 = vst [vmem:[#allocation2 + $0x8] sm:$0xff] (!%p2210_p7), %v2949_v0 }
  0x89   : > { %s3210_s3 = scalar_lea.vmem [#allocation8], %s2592_s30  ;;  %273 = vst [vmem:[#allocation2 + $0x10] sm:$0xff] (!%p2210_p7), %v2949_v0  ;;  %274 = vst [vmem:[#allocation2 + $0x18] sm:$0xff] (!%p2210_p7), %v2949_v0 }
  0x8a   : > { %275 = vst [vmem:[#allocation2 + $0x20] sm:$0xff] (!%p2210_p7), %v2949_v0  ;;  %276 = vst [vmem:[#allocation2 + $0x28] sm:$0xff] (!%p2210_p7), %v2949_v0 }
  0x8b   : > { %277 = vst [vmem:[#allocation2 + $0x30] sm:$0xff] (!%p2210_p7), %v2949_v0  ;;  %278 = vst [vmem:[#allocation2 + $0x38] sm:$0xff] (!%p2210_p7), %v2949_v0 }
  0x8c   : > { %279 = vst [vmem:[#allocation2 + $0x40] sm:$0xff] (!%p2210_p7), %v2949_v0  ;;  %280 = vst [vmem:[#allocation2 + $0x48] sm:$0xff] (!%p2210_p7), %v2949_v0 }
  0x8d   : > { %281 = vst [vmem:[#allocation2 + $0x50] sm:$0xff] (!%p2210_p7), %v2949_v0  ;;  %282 = vst [vmem:[#allocation2 + $0x58] sm:$0xff] (!%p2210_p7), %v2949_v0 }
  0x8e   : > { %283 = vst [vmem:[#allocation2 + $0x60] sm:$0xff] (!%p2210_p7), %v2949_v0  ;;  %284 = vst [vmem:[#allocation2 + $0x68] sm:$0xff] (!%p2210_p7), %v2949_v0 }
  0x8f   : > { %285 = vst [vmem:[#allocation2 + $0x70] sm:$0xff] %v2949_v0  ;;  %286 = vst [vmem:[#allocation2 + $0x78] sm:$0xff] %v2949_v0 }
  0x90   : > { %287 = vst [vmem:[#allocation2 + $0x80] sm:$0xff] %v2949_v0  ;;  %288 = vst [vmem:[#allocation2 + $0x88] sm:$0xff] %v2949_v0 }
  0x91   : > { %289 = vst [vmem:[#allocation2 + $0x90] sm:$0xff] %v2949_v0  ;;  %290 = vst [vmem:[#allocation2 + $0x98] sm:$0xff] %v2949_v0 }
  0x92   : > { %291 = vst [vmem:[#allocation2 + $0xa0] sm:$0xff] %v2949_v0  ;;  %292 = vst [vmem:[#allocation2 + $0xa8] sm:$0xff] %v2949_v0 }
  0x93   : > { %293 = vst [vmem:[#allocation2 + $0xb0] sm:$0xff] %v2949_v0  ;;  %294 = vst [vmem:[#allocation2 + $0xb8] sm:$0xff] %v2949_v0 }
  0x94   : > { %295 = vst [vmem:[#allocation2 + $0xc0] sm:$0xff] %v2949_v0  ;;  %296 = vst [vmem:[#allocation2 + $0xc8] sm:$0xff] %v2949_v0 }
  0x95   : > { %297 = vst [vmem:[#allocation2 + $0xd0] sm:$0xff] %v2949_v0  ;;  %298 = vst [vmem:[#allocation2 + $0xd8] sm:$0xff] %v2949_v0 }
  0x96   : > { %299 = vst [vmem:[#allocation2 + $0xe0] sm:$0xff] %v2949_v0  ;;  %300 = vst [vmem:[#allocation2 + $0xe8] sm:$0xff] %v2949_v0 }
  0x97   : > { %301 = vst [vmem:[#allocation2 + $0xf0] sm:$0xff] %v2949_v0  ;;  %302 = vst [vmem:[#allocation2 + $0xf8] sm:$0xff] %v2949_v0 }
  0x98   : > { %303 = vst [vmem:[#allocation2 + $0x100] sm:$0xff] %v2949_v0  ;;  %304 = vst [vmem:[#allocation2 + $0x108] sm:$0xff] %v2949_v0 }
  0x99   : > { %305 = vst [vmem:[#allocation2 + $0x110] sm:$0xff] %v2949_v0  ;;  %306 = vst [vmem:[#allocation2 + $0x118] sm:$0xff] %v2949_v0 }
  0x9a   : > { %307 = vst [vmem:[#allocation2 + $0x120] sm:$0xff] %v2949_v0  ;;  %308 = vst [vmem:[#allocation2 + $0x128] sm:$0xff] %v2949_v0 }
  0x9b   : > { %309 = vst [vmem:[#allocation2 + $0x130] sm:$0xff] %v2949_v0  ;;  %310 = vst [vmem:[#allocation2 + $0x138] sm:$0xff] %v2949_v0 }
  0x9c   : > { %311 = vst [vmem:[#allocation2 + $0x140] sm:$0xff] %v2949_v0  ;;  %312 = vst [vmem:[#allocation2 + $0x148] sm:$0xff] %v2949_v0 }
  0x9d   : > { %313 = vst [vmem:[#allocation2 + $0x150] sm:$0xff] %v2949_v0  ;;  %314 = vst [vmem:[#allocation2 + $0x158] sm:$0xff] %v2949_v0 }
  0x9e   : > { %315 = vst [vmem:[#allocation2 + $0x160] sm:$0xff] %v2949_v0  ;;  %316 = vst [vmem:[#allocation2 + $0x168] sm:$0xff] %v2949_v0 }
  0x9f   : > { %317 = vst [vmem:[#allocation2 + $0x170] sm:$0xff] %v2949_v0  ;;  %318 = vst [vmem:[#allocation2 + $0x178] sm:$0xff] %v2949_v0 }
  0xa0   : > { %319 = vst [vmem:[#allocation2 + $0x180] sm:$0xff] %v2949_v0  ;;  %320 = vst [vmem:[#allocation2 + $0x188] sm:$0xff] %v2949_v0 }
  0xa1   : > { %321 = vst [vmem:[#allocation2 + $0x190] sm:$0xff] %v2949_v0  ;;  %322 = vst [vmem:[#allocation2 + $0x198] sm:$0xff] %v2949_v0 }
  0xa2   : > { %323 = vst [vmem:[#allocation2 + $0x1a0] sm:$0xff] %v2949_v0  ;;  %324 = vst [vmem:[#allocation2 + $0x1a8] sm:$0xff] %v2949_v0 }
  0xa3   : > { %325 = vst [vmem:[#allocation2 + $0x1b0] sm:$0xff] %v2949_v0  ;;  %326 = vst [vmem:[#allocation2 + $0x1b8] sm:$0xff] %v2949_v0 }
  0xa4   : > { %327 = vst [vmem:[#allocation2 + $0x1c0] sm:$0xff] %v2949_v0  ;;  %328 = vst [vmem:[#allocation2 + $0x1c8] sm:$0xff] %v2949_v0 }
  0xa5   : > { %329 = vst [vmem:[#allocation2 + $0x1d0] sm:$0xff] %v2949_v0  ;;  %330 = vst [vmem:[#allocation2 + $0x1d8] sm:$0xff] %v2949_v0 }
  0xa6   : > { %331 = vst [vmem:[#allocation2 + $0x1e0] sm:$0xff] %v2949_v0  ;;  %332 = vst [vmem:[#allocation2 + $0x1e8] sm:$0xff] %v2949_v0 }
  0xa7   : > { %333 = vst [vmem:[#allocation2 + $0x1f0] sm:$0xff] %v2949_v0  ;;  %334 = vst [vmem:[#allocation2 + $0x1f8] sm:$0xff] %v2949_v0 }
  0xa8   : > { %335 = vst [vmem:[#allocation2 + $0x200] sm:$0xff] %v2949_v0  ;;  %336 = vst [vmem:[#allocation2 + $0x208] sm:$0xff] %v2949_v0 }
  0xa9   : > { %337 = vst [vmem:[#allocation2 + $0x210] sm:$0xff] %v2949_v0  ;;  %338 = vst [vmem:[#allocation2 + $0x218] sm:$0xff] %v2949_v0 }
  0xaa   : > { %339 = vst [vmem:[#allocation2 + $0x220] sm:$0xff] %v2949_v0  ;;  %340 = vst [vmem:[#allocation2 + $0x228] sm:$0xff] %v2949_v0 }
  0xab   : > { %341 = vst [vmem:[#allocation2 + $0x230] sm:$0xff] %v2949_v0  ;;  %342 = vst [vmem:[#allocation2 + $0x238] sm:$0xff] %v2949_v0 }
  0xac   : > { %343 = vst [vmem:[#allocation2 + $0x240] sm:$0xff] %v2949_v0  ;;  %344 = vst [vmem:[#allocation2 + $0x248] sm:$0xff] %v2949_v0 }
  0xad   : > { %345 = vst [vmem:[#allocation2 + $0x250] sm:$0xff] %v2949_v0  ;;  %346 = vst [vmem:[#allocation2 + $0x258] sm:$0xff] %v2949_v0 }
  0xae   : > { %347 = vst [vmem:[#allocation2 + $0x260] sm:$0xff] %v2949_v0  ;;  %348 = vst [vmem:[#allocation2 + $0x268] sm:$0xff] %v2949_v0 }
  0xaf   : > { %349 = vst [vmem:[#allocation2 + $0x270] sm:$0xff] %v2949_v0  ;;  %350 = vst [vmem:[#allocation2 + $0x278] sm:$0xff] %v2949_v0 }
  0xb0   : > { %351 = vst [vmem:[#allocation2 + $0x280] sm:$0xff] %v2949_v0  ;;  %352 = vst [vmem:[#allocation2 + $0x288] sm:$0xff] %v2949_v0 }
  0xb1   : > { %353 = vst [vmem:[#allocation2 + $0x290] sm:$0xff] %v2949_v0  ;;  %354 = vst [vmem:[#allocation2 + $0x298] sm:$0xff] %v2949_v0 }
  0xb2   : > { %355 = vst [vmem:[#allocation2 + $0x2a0] sm:$0xff] %v2949_v0  ;;  %356 = vst [vmem:[#allocation2 + $0x2a8] sm:$0xff] %v2949_v0 }
  0xb3   : > { %357 = vst [vmem:[#allocation2 + $0x2b0] sm:$0xff] %v2949_v0  ;;  %358 = vst [vmem:[#allocation2 + $0x2b8] sm:$0xff] %v2949_v0 }
  0xb4   : > { %359 = vst [vmem:[#allocation2 + $0x2c0] sm:$0xff] %v2949_v0  ;;  %360 = vst [vmem:[#allocation2 + $0x2c8] sm:$0xff] %v2949_v0 }
  0xb5   : > { %361 = vst [vmem:[#allocation2 + $0x2d0] sm:$0xff] %v2949_v0  ;;  %362 = vst [vmem:[#allocation2 + $0x2d8] sm:$0xff] %v2949_v0 }
  0xb6   : > { %363 = vst [vmem:[#allocation2 + $0x2e0] sm:$0xff] %v2949_v0  ;;  %364 = vst [vmem:[#allocation2 + $0x2e8] sm:$0xff] %v2949_v0 }
  0xb7   : > { %365 = vst [vmem:[#allocation2 + $0x2f0] sm:$0xff] %v2949_v0  ;;  %366 = vst [vmem:[#allocation2 + $0x2f8] sm:$0xff] %v2949_v0 }
  0xb8 PF: > { %s3935_s25 = sld [smem:[#allocation15_spill]] }
  0xbe   : > { %p2211_p13 = scmp.ge.s32.totalorder %s3935_s25, 1 }
  0xbf   : > { %v564_v1 = vld [vmem:[%s3201_s18 + $0x8] sm:$0xff] (!%p2211_p13)  ;;  %v567_v2 = vld [vmem:[%s3201_s18 + $0x20] sm:$0xff] (!%p2211_p13)  ;;  %v565_v3 = vld [vmem:[%s3201_s18 + $0x10] sm:$0xff] (!%p2211_p13)  ;;  %v2950_v4 = vmov (!%p2211_p13), 0.0|0.0  }
  0xc0   : > { %370 = sbr.rel (%p2211_p13) target bundleno = 726 (0x2d6), region = 44  ;;  %2443 = vmatprep.subr.bf16.mxu1 (!%p2211_p13), %v2950_v4  ;;  %v2347_v5 = vpack.c.bf16 (!%p2211_p13), %v567_v2, %v564_v1  ;;  %v568_v6 = vld [vmem:[%s3201_s18 + $0x28] sm:$0xff] (!%p2211_p13)  ;;  %v563_v7 = vld [vmem:[%s3201_s18] sm:$0xff] (!%p2211_p13)  ;;  %v566_v8 = vld [vmem:[%s3201_s18 + $0x18] sm:$0xff] (!%p2211_p13) }
  0xc1   : > { %v2444_v9 = vpack.c.bf16 (!%p2211_p13), %v568_v6, %v565_v3  ;;  %v2349_v10 = vpack.c.bf16 (!%p2211_p13), %v566_v8, %v563_v7  ;;  %v570_v11 = vld [vmem:[%s3201_s18 + $0x38] sm:$0xff] (!%p2211_p13)  ;;  %v573_v12 = vld [vmem:[%s3201_s18 + $0x50] sm:$0xff] (!%p2211_p13)  ;;  %v571_v13 = vld [vmem:[%s3201_s18 + $0x40] sm:$0xff] (!%p2211_p13) }
  0xc2   : > { %2348 = vmatprep.subr.bf16.mxu0 (!%p2211_p13), %v2347_v5  ;;  %v2351_v14 = vpack.c.bf16 (!%p2211_p13), %v573_v12, %v570_v11  ;;  %v574_v15 = vld [vmem:[%s3201_s18 + $0x58] sm:$0xff] (!%p2211_p13)  ;;  %v569_v16 = vld [vmem:[%s3201_s18 + $0x30] sm:$0xff] (!%p2211_p13)  ;;  %v572_v17 = vld [vmem:[%s3201_s18 + $0x48] sm:$0xff] (!%p2211_p13) }
  0xc3   : > { %2445 = vmatpush1.bf16.msra.mxu1 (!%p2211_p13), %v2444_v9  ;;  %2350 = vmatpush1.bf16.msra.mxu0 (!%p2211_p13), %v2349_v10  ;;  %v2447_v18 = vpack.c.bf16 (!%p2211_p13), %v574_v15, %v571_v13  ;;  %v2353_v19 = vpack.c.bf16 (!%p2211_p13), %v572_v17, %v569_v16  ;;  %v576_v20 = vld [vmem:[%s3201_s18 + $0x68] sm:$0xff] (!%p2211_p13)  ;;  %v579_v21 = vld [vmem:[%s3201_s18 + $0x80] sm:$0xff] (!%p2211_p13)  ;;  %v577_v22 = vld [vmem:[%s3201_s18 + $0x70] sm:$0xff] (!%p2211_p13) }
  0xc4   : > { %2446 = vmatprep.subr.bf16.mxu1 (!%p2211_p13), %v2950_v4  ;;  %2352 = vmatprep.subr.bf16.mxu0 (!%p2211_p13), %v2351_v14  ;;  %v2355_v23 = vpack.c.bf16 (!%p2211_p13), %v579_v21, %v576_v20  ;;  %v580_v24 = vld [vmem:[%s3201_s18 + $0x88] sm:$0xff] (!%p2211_p13)  ;;  %v575_v25 = vld [vmem:[%s3201_s18 + $0x60] sm:$0xff] (!%p2211_p13)  ;;  %v578_v26 = vld [vmem:[%s3201_s18 + $0x78] sm:$0xff] (!%p2211_p13) }
  0xc5   : > { %v582_v27 = vld [vmem:[%s3201_s18 + $0x98] sm:$0xff] (!%p2211_p13)  ;;  %v585_v28 = vld [vmem:[%s3201_s18 + $0xb0] sm:$0xff] (!%p2211_p13)  ;;  %v2450_v29 = vpack.c.bf16 (!%p2211_p13), %v580_v24, %v577_v22  ;;  %v2357_v30 = vpack.c.bf16 (!%p2211_p13), %v578_v26, %v575_v25  ;;  %v583_v31 = vld [vmem:[%s3201_s18 + $0xa0] sm:$0xff] (!%p2211_p13) }
  0xc6   : > { %v2359_v32 = vpack.c.bf16 (!%p2211_p13), %v585_v28, %v582_v27  ;;  %v586_v33 = vld [vmem:[%s3201_s18 + $0xb8] sm:$0xff] (!%p2211_p13)  ;;  %v581_v34 = vld [vmem:[%s3201_s18 + $0x90] sm:$0xff] (!%p2211_p13)  ;;  %v584_v35 = vld [vmem:[%s3201_s18 + $0xa8] sm:$0xff] (!%p2211_p13) }
  0xc7   : > { %2448 = vmatpush1.bf16.msra.mxu1 %v2447_v18  ;;  %2354 = vmatpush1.bf16.msra.mxu0 %v2353_v19  ;;  %v588_v36 = vld [vmem:[%s3201_s18 + $0xc8] sm:$0xff]  ;;  %v591_v37 = vld [vmem:[%s3201_s18 + $0xe0] sm:$0xff]  ;;  %v2453_v38 = vpack.c.bf16 %v586_v33, %v583_v31  ;;  %v2361_v39 = vpack.c.bf16 %v584_v35, %v581_v34  ;;  %v589_v40 = vld [vmem:[%s3201_s18 + $0xd0] sm:$0xff] }
  0xc8   : > { %2449 = vmatprep.subr.bf16.mxu1 %v2950_v4  ;;  %2356 = vmatprep.subr.bf16.mxu0 %v2355_v23  ;;  %v2363_v41 = vpack.c.bf16 %v591_v37, %v588_v36  ;;  %v592_v42 = vld [vmem:[%s3201_s18 + $0xe8] sm:$0xff]  ;;  %v587_v43 = vld [vmem:[%s3201_s18 + $0xc0] sm:$0xff]  ;;  %v590_v44 = vld [vmem:[%s3201_s18 + $0xd8] sm:$0xff] }
  0xc9   : > { %v594_v45 = vld [vmem:[%s3201_s18 + $0xf8] sm:$0xff]  ;;  %v597_v46 = vld [vmem:[%s3201_s18 + $0x110] sm:$0xff]  ;;  %v2456_v47 = vpack.c.bf16 %v592_v42, %v589_v40  ;;  %v2365_v48 = vpack.c.bf16 %v590_v44, %v587_v43  ;;  %v595_v49 = vld [vmem:[%s3201_s18 + $0x100] sm:$0xff] }
  0xca   : > { %v2367_v50 = vpack.c.bf16 %v597_v46, %v594_v45  ;;  %v598_v51 = vld [vmem:[%s3201_s18 + $0x118] sm:$0xff]  ;;  %v593_v52 = vld [vmem:[%s3201_s18 + $0xf0] sm:$0xff]  ;;  %v596_v53 = vld [vmem:[%s3201_s18 + $0x108] sm:$0xff] }
  0xcb   : > { %2451 = vmatpush1.bf16.msra.mxu1 %v2450_v29  ;;  %2358 = vmatpush1.bf16.msra.mxu0 %v2357_v30  ;;  %v600_v54 = vld [vmem:[%s3201_s18 + $0x128] sm:$0xff]  ;;  %v603_v55 = vld [vmem:[%s3201_s18 + $0x140] sm:$0xff]  ;;  %v2459_v56 = vpack.c.bf16 %v598_v51, %v595_v49  ;;  %v2369_v57 = vpack.c.bf16 %v596_v53, %v593_v52  ;;  %v601_v58 = vld [vmem:[%s3201_s18 + $0x130] sm:$0xff] }
  0xcc   : > { %2452 = vmatprep.subr.bf16.mxu1 %v2950_v4  ;;  %2360 = vmatprep.subr.bf16.mxu0 %v2359_v32  ;;  %v2371_v59 = vpack.c.bf16 %v603_v55, %v600_v54  ;;  %v604_v60 = vld [vmem:[%s3201_s18 + $0x148] sm:$0xff]  ;;  %v599_v61 = vld [vmem:[%s3201_s18 + $0x120] sm:$0xff]  ;;  %v602_v62 = vld [vmem:[%s3201_s18 + $0x138] sm:$0xff] }
  0xcd   : > { %v606_v63 = vld [vmem:[%s3201_s18 + $0x158] sm:$0xff]  ;;  %v609_v0 = vld [vmem:[%s3201_s18 + $0x170] sm:$0xff]  ;;  %v2462_v1 = vpack.c.bf16 %v604_v60, %v601_v58  ;;  %v2373_v2 = vpack.c.bf16 %v602_v62, %v599_v61  ;;  %v607_v3 = vld [vmem:[%s3201_s18 + $0x160] sm:$0xff] }
  0xce   : > { %v2375_v5 = vpack.c.bf16 %v609_v0, %v606_v63  ;;  %v610_v6 = vld [vmem:[%s3201_s18 + $0x178] sm:$0xff]  ;;  %v605_v7 = vld [vmem:[%s3201_s18 + $0x150] sm:$0xff]  ;;  %v608_v8 = vld [vmem:[%s3201_s18 + $0x168] sm:$0xff] }
  0xcf   : > { %2454 = vmatpush1.bf16.msra.mxu1 %v2453_v38  ;;  %2362 = vmatpush1.bf16.msra.mxu0 %v2361_v39  ;;  %v612_v9 = vld [vmem:[%s3201_s18 + $0x188] sm:$0xff]  ;;  %v615_v10 = vld [vmem:[%s3201_s18 + $0x1a0] sm:$0xff]  ;;  %v2465_v11 = vpack.c.bf16 %v610_v6, %v607_v3  ;;  %v2377_v12 = vpack.c.bf16 %v608_v8, %v605_v7  ;;  %v613_v13 = vld [vmem:[%s3201_s18 + $0x190] sm:$0xff] }
  0xd0   : > { %2455 = vmatprep.subr.bf16.mxu1 %v2950_v4  ;;  %2364 = vmatprep.subr.bf16.mxu0 %v2363_v41  ;;  %v2379_v14 = vpack.c.bf16 %v615_v10, %v612_v9  ;;  %v616_v15 = vld [vmem:[%s3201_s18 + $0x1a8] sm:$0xff]  ;;  %v611_v16 = vld [vmem:[%s3201_s18 + $0x180] sm:$0xff]  ;;  %v614_v17 = vld [vmem:[%s3201_s18 + $0x198] sm:$0xff] }
  0xd1   : > { %v618_v18 = vld [vmem:[%s3201_s18 + $0x1b8] sm:$0xff]  ;;  %v621_v19 = vld [vmem:[%s3201_s18 + $0x1d0] sm:$0xff]  ;;  %v2468_v20 = vpack.c.bf16 %v616_v15, %v613_v13  ;;  %v2381_v21 = vpack.c.bf16 %v614_v17, %v611_v16  ;;  %v619_v22 = vld [vmem:[%s3201_s18 + $0x1c0] sm:$0xff] }
  0xd2   : > { %v468_v23 = vld [vmem:[%s3194_s17 + $0x8] sm:$0xff]  ;;  %v2383_v24 = vpack.c.bf16 %v621_v19, %v618_v18  ;;  %v622_v25 = vld [vmem:[%s3201_s18 + $0x1d8] sm:$0xff]  ;;  %v617_v26 = vld [vmem:[%s3201_s18 + $0x1b0] sm:$0xff] }
  0xd3   : > { %2457 = vmatpush1.bf16.msra.mxu1 %v2456_v47  ;;  %2366 = vmatpush1.bf16.msra.mxu0 %v2365_v48  ;;  %v620_v27 = vld [vmem:[%s3201_s18 + $0x1c8] sm:$0xff]  ;;  %v627_v29 = vld [vmem:[%s3201_s18 + $0x200] sm:$0xff]  ;;  %v2471_v30 = vpack.c.bf16 %v622_v25, %v619_v22  ;;  %v625_v32 = vld [vmem:[%s3201_s18 + $0x1f0] sm:$0xff] }
  0xd4   : > { %2458 = vmatprep.subr.bf16.mxu1 %v2950_v4  ;;  %2368 = vmatprep.subr.bf16.mxu0 %v2367_v50  ;;  %v624_v28 = vld [vmem:[%s3201_s18 + $0x1e8] sm:$0xff]  ;;  %v2385_v31 = vpack.c.bf16 %v620_v27, %v617_v26  ;;  %v623_v35 = vld [vmem:[%s3201_s18 + $0x1e0] sm:$0xff]  ;;  %v626_v36 = vld [vmem:[%s3201_s18 + $0x1f8] sm:$0xff] }
  0xd5   : > { %1285 = vmatprep.mubr.f32.mxu1 %v468_v23  ;;  %771 = vmatprep.mubr.f32.mxu0 %v468_v23  ;;  %v2387_v33 = vpack.c.bf16 %v627_v29, %v624_v28  ;;  %v628_v34 = vld [vmem:[%s3201_s18 + $0x208] sm:$0xff]  ;;  %v630_v37 = vld [vmem:[%s3201_s18 + $0x218] sm:$0xff]  ;;  %v633_v38 = vld [vmem:[%s3201_s18 + $0x230] sm:$0xff]  ;;  %v2389_v40 = vpack.c.bf16 %v626_v36, %v623_v35 }
  0xd6   : > { %v2474_v39 = vpack.c.bf16 %v628_v34, %v625_v32  ;;  %v631_v41 = vld [vmem:[%s3201_s18 + $0x220] sm:$0xff]  ;;  %v2391_v42 = vpack.c.bf16 %v633_v38, %v630_v37  ;;  %v634_v43 = vld [vmem:[%s3201_s18 + $0x238] sm:$0xff]  ;;  %v629_v44 = vld [vmem:[%s3201_s18 + $0x210] sm:$0xff] }
  0xd7   : > { %2460 = vmatpush1.bf16.msra.mxu1 %v2459_v56  ;;  %2370 = vmatpush1.bf16.msra.mxu0 %v2369_v57  ;;  %v632_v45 = vld [vmem:[%s3201_s18 + $0x228] sm:$0xff]  ;;  %v639_v47 = vld [vmem:[%s3201_s18 + $0x260] sm:$0xff]  ;;  %v2477_v48 = vpack.c.bf16 %v634_v43, %v631_v41  ;;  %v637_v50 = vld [vmem:[%s3201_s18 + $0x250] sm:$0xff] }
  0xd8   : > { %2461 = vmatprep.subr.bf16.mxu1 %v2950_v4  ;;  %2372 = vmatprep.subr.bf16.mxu0 %v2371_v59  ;;  %v636_v46 = vld [vmem:[%s3201_s18 + $0x248] sm:$0xff]  ;;  %v2393_v49 = vpack.c.bf16 %v632_v45, %v629_v44  ;;  %v635_v53 = vld [vmem:[%s3201_s18 + $0x240] sm:$0xff]  ;;  %v638_v54 = vld [vmem:[%s3201_s18 + $0x258] sm:$0xff] }
  0xd9   : > { %v2395_v51 = vpack.c.bf16 %v639_v47, %v636_v46  ;;  %v640_v52 = vld [vmem:[%s3201_s18 + $0x268] sm:$0xff]  ;;  %v642_v55 = vld [vmem:[%s3201_s18 + $0x278] sm:$0xff]  ;;  %v645_v56 = vld [vmem:[%s3201_s18 + $0x290] sm:$0xff]  ;;  %v2397_v58 = vpack.c.bf16 %v638_v54, %v635_v53 }
  0xda   : > { %v2480_v57 = vpack.c.bf16 %v640_v52, %v637_v50  ;;  %v643_v59 = vld [vmem:[%s3201_s18 + $0x280] sm:$0xff]  ;;  %v2399_v60 = vpack.c.bf16 %v645_v56, %v642_v55  ;;  %v646_v61 = vld [vmem:[%s3201_s18 + $0x298] sm:$0xff]  ;;  %v641_v62 = vld [vmem:[%s3201_s18 + $0x270] sm:$0xff] }
  0xdb   : > { %2463 = vmatpush1.bf16.msra.mxu1 %v2462_v1  ;;  %2374 = vmatpush1.bf16.msra.mxu0 %v2373_v2  ;;  %v644_v63 = vld [vmem:[%s3201_s18 + $0x288] sm:$0xff]  ;;  %v651_v1 = vld [vmem:[%s3201_s18 + $0x2c0] sm:$0xff]  ;;  %v2483_v2 = vpack.c.bf16 %v646_v61, %v643_v59  ;;  %v650_v9 = vld [vmem:[%s3201_s18 + $0x2b8] sm:$0xff] }
  0xdc   : > { %2464 = vmatprep.subr.bf16.mxu1 %v2950_v4  ;;  %2376 = vmatprep.subr.bf16.mxu0 %v2375_v5  ;;  %v648_v0 = vld [vmem:[%s3201_s18 + $0x2a8] sm:$0xff]  ;;  %v2401_v3 = vpack.c.bf16 %v644_v63, %v641_v62  ;;  %v649_v5 = vld [vmem:[%s3201_s18 + $0x2b0] sm:$0xff]  ;;  %v647_v8 = vld [vmem:[%s3201_s18 + $0x2a0] sm:$0xff] }
  0xdd   : > { %v2403_v6 = vpack.c.bf16 %v651_v1, %v648_v0  ;;  %v652_v7 = vld [vmem:[%s3201_s18 + $0x2c8] sm:$0xff]  ;;  %v654_v10 = vld [vmem:[%s3201_s18 + $0x2d8] sm:$0xff]  ;;  %v2405_v13 = vpack.c.bf16 %v650_v9, %v647_v8  ;;  %v653_v17 = vld [vmem:[%s3201_s18 + $0x2d0] sm:$0xff] }
  0xde   : > { %v658_v15 = vld [vmem:[%s3201_s18 + $0x2f8] sm:$0xff]  ;;  %v656_v18 = vld [vmem:[%s3201_s18 + $0x2e8] sm:$0xff]  ;;  %v659_v26 = vld [vmem:[%s3201_s18 + $0x300] sm:$0xff] }
  0xdf   : > { %2466 = vmatpush1.bf16.msra.mxu1 %v2465_v11  ;;  %2378 = vmatpush1.bf16.msra.mxu0 %v2377_v12  ;;  %v657_v11 = vld [vmem:[%s3201_s18 + $0x2f0] sm:$0xff]  ;;  %v2486_v12 = vpack.c.bf16 %v652_v7, %v649_v5  ;;  %v660_v19 = vld [vmem:[%s3201_s18 + $0x308] sm:$0xff]  ;;  %v662_v27 = vld [vmem:[%s3201_s18 + $0x318] sm:$0xff] }
  0xe0   : > { %2467 = vmatprep.subr.bf16.mxu1 %v2950_v4  ;;  %2380 = vmatprep.subr.bf16.mxu0 %v2379_v14  ;;  %v655_v14 = vld [vmem:[%s3201_s18 + $0x2e0] sm:$0xff]  ;;  %v2407_v16 = vpack.c.bf16 %v657_v11, %v654_v10  ;;  %v664_v22 = vld [vmem:[%s3201_s18 + $0x328] sm:$0xff]  ;;  %v666_v29 = vld [vmem:[%s3201_s18 + $0x338] sm:$0xff]  ;;  %v2413_v32 = vpack.c.bf16 %v662_v27, %v659_v26 }
  0xe1   : > { %v2489_v23 = vpack.c.bf16 %v658_v15, %v655_v14  ;;  %v665_v34 = vld [vmem:[%s3201_s18 + $0x330] sm:$0xff]  ;;  %v668_v35 = vld [vmem:[%s3201_s18 + $0x348] sm:$0xff]  ;;  %v667_v36 = vld [vmem:[%s3201_s18 + $0x340] sm:$0xff] }
  0xe2   : > { %v670_v37 = vld [vmem:[%s3201_s18 + $0x358] sm:$0xff]  ;;  %v672_v38 = vld [vmem:[%s3201_s18 + $0x368] sm:$0xff]  ;;  %v671_v43 = vld [vmem:[%s3201_s18 + $0x360] sm:$0xff] }
  0xe3   : > { %2469 = vmatpush1.bf16.msra.mxu1 %v2468_v20  ;;  %2382 = vmatpush1.bf16.msra.mxu0 %v2381_v21  ;;  %v663_v20 = vld [vmem:[%s3201_s18 + $0x320] sm:$0xff]  ;;  %v661_v21 = vld [vmem:[%s3201_s18 + $0x310] sm:$0xff]  ;;  %v474_v41 = vld [vmem:[%s3194_s17 + $0x38] sm:$0xff]  ;;  %v2495_v44 = vpack.c.bf16 %v670_v37, %v667_v36 }
  0xe4   : > { %2470 = vmatprep.subr.bf16.mxu1 %v2950_v4  ;;  %2384 = vmatprep.subr.bf16.mxu0 %v2383_v24  ;;  %v2409_v24 = vpack.c.bf16 %v656_v18, %v653_v17  ;;  %v2411_v25 = vpack.c.bf16 %v663_v20, %v660_v19  ;;  %v2491_v28 = vpack.c.bf16 %v664_v22, %v661_v21  ;;  %v674_v46 = vld [vmem:[%s3201_s18 + $0x378] sm:$0xff]  ;;  %v673_v47 = vld [vmem:[%s3201_s18 + $0x370] sm:$0xff]  ;;  %v687_v61 = vld [vmem:[%s3201_s18 + $0x3e0] sm:$0xff] }
  0xe5   : > { %v681_v50 = vld [vmem:[%s3201_s18 + $0x3b0] sm:$0xff]  ;;  %v2421_v53 = vpack.c.bf16 %v674_v46, %v671_v43  ;;  %v682_v59 = vld [vmem:[%s3201_s18 + $0x3b8] sm:$0xff]  ;;  %v476_v62 = vld [vmem:[%s3194_s17 + $0x48] sm:$0xff] }
  0xe6   : > { %v477_v52 = vld [vmem:[%s3194_s17 + $0x50] sm:$0xff]  ;;  %v480_v63 = vld [vmem:[%s3194_s17 + $0x68] sm:$0xff]  ;;  %v683_v1 = vld [vmem:[%s3201_s18 + $0x3c0] sm:$0xff] }
  0xe7   : > { %2472 = vmatpush1.bf16.msra.mxu1 %v2471_v30  ;;  %2386 = vmatpush1.bf16.msra.mxu0 %v2385_v31  ;;  %v669_v30 = vld [vmem:[%s3201_s18 + $0x350] sm:$0xff]  ;;  %v467_v31 = vld [vmem:[%s3194_s17] sm:$0xff]  ;;  %v686_v5 = vld [vmem:[%s3201_s18 + $0x3d8] sm:$0xff] }
  0xe8   : > { %2473 = vmatprep.subr.bf16.mxu1 %v2950_v4  ;;  %2388 = vmatprep.subr.bf16.mxu0 %v2387_v33  ;;  %v2415_v33 = vpack.c.bf16 %v669_v30, %v666_v29  ;;  %v677_v54 = vld [vmem:[%s3201_s18 + $0x390] sm:$0xff]  ;;  %v688_v7 = vld [vmem:[%s3201_s18 + $0x3e8] sm:$0xff]  ;;  %v690_v8 = vld [vmem:[%s3201_s18 + $0x3f8] sm:$0xff] }
  0xe9   : > { %v693_v9 = vld [vmem:[%s3201_s18 + $0x410] sm:$0xff]  ;;  %v479_v10 = vld [vmem:[%s3194_s17 + $0x60] sm:$0xff]  ;;  %v694_v18 = vld [vmem:[%s3201_s18 + $0x418] sm:$0xff] }
  0xea   : > { %v483_v11 = vld [vmem:[%s3194_s17 + $0x80] sm:$0xff]  ;;  %v2431_v15 = vpack.c.bf16 %v693_v9, %v690_v8  ;;  %v696_v19 = vld [vmem:[%s3201_s18 + $0x428] sm:$0xff]  ;;  %v482_v21 = vld [vmem:[%s3194_s17 + $0x78] sm:$0xff] }
  0xeb   : > { %2475 = vmatpush1.bf16.msra.mxu1 %v2474_v39  ;;  %2390 = vmatpush1.bf16.msra.mxu0 %v2389_v40  ;;  %v675_v39 = vld [vmem:[%s3201_s18 + $0x380] sm:$0xff]  ;;  %v470_v40 = vld [vmem:[%s3194_s17 + $0x18] sm:$0xff]  ;;  %v700_v29 = vld [vmem:[%s3201_s18 + $0x448] sm:$0xff] }
  0xec   : > { %2476 = vmatprep.subr.bf16.mxu1 %v2950_v4  ;;  %2392 = vmatprep.subr.bf16.mxu0 %v2391_v42  ;;  %v2417_v42 = vpack.c.bf16 %v668_v35, %v665_v34  ;;  %v2419_v45 = vpack.c.bf16 %v675_v39, %v672_v38  ;;  %v691_v17 = vld [vmem:[%s3201_s18 + $0x400] sm:$0xff]  ;;  %v486_v22 = vld [vmem:[%s3194_s17 + $0x98] sm:$0xff]  ;;  %v701_v34 = vld [vmem:[%s3201_s18 + $0x450] sm:$0xff] }
  0xed   : > { %v699_v20 = vld [vmem:[%s3201_s18 + $0x440] sm:$0xff]  ;;  %v698_v27 = vld [vmem:[%s3201_s18 + $0x438] sm:$0xff]  ;;  %v704_v37 = vld [vmem:[%s3201_s18 + $0x468] sm:$0xff] }
  0xee   : > { %v2435_v26 = vpack.c.bf16 %v699_v20, %v696_v19  ;;  %v702_v30 = vld [vmem:[%s3201_s18 + $0x458] sm:$0xff]  ;;  %v703_v38 = vld [vmem:[%s3201_s18 + $0x460] sm:$0xff]  ;;  %v533_v9 = vld [vmem:[%s3194_s17 + $0x210] sm:$0xff] }
  0xef   : > { %2478 = vmatpush1.bf16.msra.mxu1 %v2477_v48  ;;  %2394 = vmatpush1.bf16.msra.mxu0 %v2393_v49  ;;  %v676_v48 = vld [vmem:[%s3201_s18 + $0x388] sm:$0xff]  ;;  %v678_v49 = vld [vmem:[%s3201_s18 + $0x398] sm:$0xff] }
  0xf0   : > { %2479 = vmatprep.subr.bf16.mxu1 %v2950_v4  ;;  %2396 = vmatprep.subr.bf16.mxu0 %v2395_v51  ;;  %v473_v51 = vld [vmem:[%s3194_s17 + $0x30] sm:$0xff]  ;;  %v2499_v55 = vpack.c.bf16 %v676_v48, %v673_v47  ;;  %v2423_v56 = vpack.c.bf16 %v681_v50, %v678_v49  ;;  %v706_v39 = vld [vmem:[%s3201_s18 + $0x478] sm:$0xff]  ;;  %v500_v50 = vld [vmem:[%s3194_s17 + $0x108] sm:$0xff] }
  0xf1   : > { %v2519_v43 = vpack.c.bf16 %v706_v39, %v703_v38  ;;  %v494_v46 = vld [vmem:[%s3194_s17 + $0xd8] sm:$0xff]  ;;  %v497_v48 = vld [vmem:[%s3194_s17 + $0xf0] sm:$0xff]  ;;  %v548_v19 = vld [vmem:[%s3194_s17 + $0x288] sm:$0xff] }
  0xf2   : > { %v498_v47 = vld [vmem:[%s3194_s17 + $0xf8] sm:$0xff]  ;;  %v501_v49 = vld [vmem:[%s3194_s17 + $0x110] sm:$0xff]  ;;  %v552_v20 = vld [vmem:[%s3194_s17 + $0x2a8] sm:$0xff] }
  0xf3   : > { %2481 = vmatpush1.bf16.msra.mxu1 %v2480_v57  ;;  %2398 = vmatpush1.bf16.msra.mxu0 %v2397_v58  ;;  %v680_v57 = vld [vmem:[%s3201_s18 + $0x3a8] sm:$0xff]  ;;  %v679_v58 = vld [vmem:[%s3201_s18 + $0x3a0] sm:$0xff]  ;;  %v534_v8 = vld [vmem:[%s3194_s17 + $0x218] sm:$0xff] }
  0xf4   : > { %2482 = vmatprep.subr.bf16.mxu1 %v2950_v4  ;;  %2400 = vmatprep.subr.bf16.mxu0 %v2399_v60  ;;  %v684_v60 = vld [vmem:[%s3201_s18 + $0x3c8] sm:$0xff]  ;;  %v2425_v0 = vpack.c.bf16 %v680_v57, %v677_v54  ;;  %v506_v54 = vld [vmem:[%s3194_s17 + $0x138] sm:$0xff]  ;;  %v513_v57 = vld [vmem:[%s3194_s17 + $0x170] sm:$0xff] }
  0xf5   : > { %v499_v38 = vld [vmem:[%s3194_s17 + $0x100] sm:$0xff]  ;;  %v502_v39 = vld [vmem:[%s3194_s17 + $0x118] sm:$0xff] }
  0xf7   : > { %2484 = vmatpush1.bf16.msra.mxu1 %v2483_v2  ;;  %2402 = vmatpush1.bf16.msra.mxu0 %v2401_v3  ;;  %v2503_v2 = vpack.c.bf16 %v682_v59, %v679_v58  ;;  %v2427_v3 = vpack.c.bf16 %v687_v61, %v684_v60  ;;  %v512_v58 = vld [vmem:[%s3194_s17 + $0x168] sm:$0xff]  ;;  %v515_v60 = vld [vmem:[%s3194_s17 + $0x180] sm:$0xff] }
  0xf8   : > { %2485 = vmatprep.subr.bf16.mxu1 %v2950_v4  ;;  %2404 = vmatprep.subr.bf16.mxu0 %v2403_v6  ;;  %v685_v6 = vld [vmem:[%s3201_s18 + $0x3d0] sm:$0xff]  ;;  %v516_v59 = vld [vmem:[%s3194_s17 + $0x188] sm:$0xff]  ;;  %v519_v61 = vld [vmem:[%s3194_s17 + $0x1a0] sm:$0xff] }
  0xf9   : > { %v2507_v14 = vpack.c.bf16 %v688_v7, %v685_v6  ;;  %v531_v6 = vld [vmem:[%s3194_s17 + $0x200] sm:$0xff]  ;;  %v530_v7 = vld [vmem:[%s3194_s17 + $0x1f8] sm:$0xff] }
  0xfb   : > { %2487 = vmatpush1.bf16.msra.mxu1 %v2486_v12  ;;  %2406 = vmatpush1.bf16.msra.mxu0 %v2405_v13  ;;  %v2429_v12 = vpack.c.bf16 %v686_v5, %v683_v1  ;;  %v689_v13 = vld [vmem:[%s3201_s18 + $0x3f0] sm:$0xff]  ;;  %v527_v5 = vld [vmem:[%s3194_s17 + $0x1e0] sm:$0xff] }
  0xfc   : > { %2488 = vmatprep.subr.bf16.mxu1 %v2950_v4  ;;  %2408 = vmatprep.subr.bf16.mxu0 %v2407_v16  ;;  %v471_v4 = vld [vmem:[%s3194_s17 + $0x20] sm:$0xff]  ;;  %v692_v16 = vld [vmem:[%s3201_s18 + $0x408] sm:$0xff]  ;;  %v525_v1 = vld [vmem:[%s3194_s17 + $0x1d0] sm:$0xff] }
  0xff   : > { %2490 = vmatpush1.bf16.msra.mxu1 %v2489_v23  ;;  %2410 = vmatpush1.bf16.msra.mxu0 %v2409_v24  ;;  %v2433_v23 = vpack.c.bf16 %v692_v16, %v689_v13  ;;  %v695_v24 = vld [vmem:[%s3201_s18 + $0x420] sm:$0xff]  ;;  %v546_v16 = vld [vmem:[%s3194_s17 + $0x278] sm:$0xff] }
 0x100   : > { %2412 = vmatprep.subr.bf16.mxu0 %v2411_v25  ;;  %2492 = vmatprep.subr.bf16.mxu1 %v2491_v28  ;;  %v2511_v25 = vpack.c.bf16 %v694_v18, %v691_v17  ;;  %v539_v13 = vld [vmem:[%s3194_s17 + $0x240] sm:$0xff]  ;;  %v545_v17 = vld [vmem:[%s3194_s17 + $0x270] sm:$0xff] }
 0x101   : > { %v549_v18 = vld [vmem:[%s3194_s17 + $0x290] sm:$0xff] }
 0x102   : > { %1286 = vmatmul.mubr.f32.vlgmr.msra.gmra.mrb[0].mxu1 %v467_v31  ;;  %772 = vmatmul.mubr.f32.vlgmr.msra.gmra.mrb[0].mxu0 %v467_v31  ;;  %v705_v31 = vld [vmem:[%s3201_s18 + $0x470] sm:$0xff] }
 0x103   : > { %2414 = vmatpush1.bf16.msra.mxu0 %v2413_v32  ;;  %1290 = vmatprep.mubr.f32.mxu1 %v471_v4  ;;  %v485_v32 = vld [vmem:[%s3194_s17 + $0x90] sm:$0xff]  ;;  %v2439_v36 = vpack.c.bf16 %v705_v31, %v702_v30  ;;  %v472_v30 = vld [vmem:[%s3194_s17 + $0x28] sm:$0xff]  ;;  %v475_v31 = vld [vmem:[%s3194_s17 + $0x40] sm:$0xff] }
 0x104   : > { %777 = vmatprep.mubr.f32.mxu0 %v471_v4  ;;  %2416 = vmatprep.subr.bf16.mxu0 %v2415_v33  ;;  %v489_v4 = vld [vmem:[%s3194_s17 + $0xb0] sm:$0xff]  ;;  %v2437_v33 = vpack.c.bf16 %v698_v27, %v695_v24  ;;  %v558_v24 = vld [vmem:[%s3194_s17 + $0x2d8] sm:$0xff]  ;;  %v560_v27 = vld [vmem:[%s3194_s17 + $0x2e8] sm:$0xff] }
 0x105   : > { %2494 = vmatpush3.bf16.msra.mxu1 %v2491_v28  ;;  %v697_v28 = vld [vmem:[%s3201_s18 + $0x430] sm:$0xff] }
 0x106   : > { %1291 = vmatmul.mubr.f32.gmra.mrb[2].mxu1 %v470_v40  ;;  %778 = vmatmul.mubr.f32.gmra.mrb[2].mxu0 %v470_v40  ;;  %v2515_v35 = vpack.c.bf16 %v700_v29, %v697_v28  ;;  %v488_v40 = vld [vmem:[%s3194_s17 + $0xa8] sm:$0xff]  ;;  %v469_v28 = vld [vmem:[%s3194_s17 + $0x10] sm:$0xff]  ;;  %v2951_v29 = vmov 0.0  }
 0x107   : > { %1295 = vmatprep.mubr.f32.mxu1 %v474_v41  ;;  %783 = vmatprep.mubr.f32.mxu0 %v474_v41  ;;  %v492_v41 = vld [vmem:[%s3194_s17 + $0xc8] sm:$0xff] }
 0x108   : > { %2418 = vmatpush1.bf16.msra.mxu0 %v2417_v42  ;;  %2496 = vmatprep.subr.bf16.mxu1 %v2495_v44  ;;  %v2441_v42 = vpack.c.bf16 %v704_v37, %v701_v34  ;;  %v487_v34 = vld [vmem:[%s3194_s17 + $0xa0] sm:$0xff]  ;;  %v496_v37 = vld [vmem:[%s3194_s17 + $0xe8] sm:$0xff] }
 0x109   : > { %2420 = vmatprep.subr.bf16.mxu0 %v2419_v45  ;;  %2498 = vmatpush3.bf16.msra.mxu1 %v2495_v44  ;;  %v491_v44 = vld [vmem:[%s3194_s17 + $0xc0] sm:$0xff] }
 0x10a   : > { %1296 = vmatmul.mubr.f32.gmra.mrb[4].mxu1 %v473_v51  ;;  %784 = vmatmul.mubr.f32.gmra.mrb[4].mxu0 %v473_v51  ;;  %v495_v45 = vld [vmem:[%s3194_s17 + $0xe0] sm:$0xff]  ;;  %v504_v51 = vld [vmem:[%s3194_s17 + $0x128] sm:$0xff] }
 0x10b   : > { %1300 = vmatprep.mubr.f32.mxu1 %v477_v52  ;;  %789 = vmatprep.mubr.f32.mxu0 %v477_v52  ;;  %v503_v52 = vld [vmem:[%s3194_s17 + $0x120] sm:$0xff] }
 0x10c   : > { %2422 = vmatpush1.bf16.msra.mxu0 %v2421_v53  ;;  %2500 = vmatprep.subr.bf16.mxu1 %v2499_v55  ;;  %v507_v53 = vld [vmem:[%s3194_s17 + $0x140] sm:$0xff] }
 0x10d   : > { %2424 = vmatprep.subr.bf16.mxu0 %v2423_v56  ;;  %2502 = vmatpush3.bf16.msra.mxu1 %v2499_v55  ;;  %v510_v55 = vld [vmem:[%s3194_s17 + $0x158] sm:$0xff]  ;;  %v509_v56 = vld [vmem:[%s3194_s17 + $0x150] sm:$0xff] }
 0x10e   : > { %1301 = vmatmul.mubr.f32.gmra.mrb[6].mxu1 %v476_v62  ;;  %790 = vmatmul.mubr.f32.gmra.mrb[6].mxu0 %v476_v62  ;;  %v518_v62 = vld [vmem:[%s3194_s17 + $0x198] sm:$0xff] }
 0x10f   : > { %1305 = vmatprep.mubr.f32.mxu1 %v480_v63  ;;  %795 = vmatprep.mubr.f32.mxu0 %v480_v63  ;;  %v522_v63 = vld [vmem:[%s3194_s17 + $0x1b8] sm:$0xff] }
 0x110   : > { %2426 = vmatpush1.bf16.msra.mxu0 %v2425_v0  ;;  %2504 = vmatprep.subr.bf16.mxu1 %v2503_v2  ;;  %v521_v0 = vld [vmem:[%s3194_s17 + $0x1b0] sm:$0xff] }
 0x111   : > { %2428 = vmatprep.subr.bf16.mxu0 %v2427_v3  ;;  %2506 = vmatpush3.bf16.msra.mxu1 %v2503_v2  ;;  %v524_v2 = vld [vmem:[%s3194_s17 + $0x1c8] sm:$0xff] }
 0x112   : > { %1306 = vmatmul.mubr.f32.gmra.mrb[8].mxu1 %v479_v10  ;;  %796 = vmatmul.mubr.f32.gmra.mrb[8].mxu0 %v479_v10  ;;  %v528_v3 = vld [vmem:[%s3194_s17 + $0x1e8] sm:$0xff]  ;;  %v537_v10 = vld [vmem:[%s3194_s17 + $0x230] sm:$0xff] }
 0x113   : > { %1310 = vmatprep.mubr.f32.mxu1 %v483_v11  ;;  %801 = vmatprep.mubr.f32.mxu0 %v483_v11  ;;  %v536_v11 = vld [vmem:[%s3194_s17 + $0x228] sm:$0xff] }
 0x114   : > { %2430 = vmatpush1.bf16.msra.mxu0 %v2429_v12  ;;  %2508 = vmatprep.subr.bf16.mxu1 %v2507_v14  ;;  %v540_v12 = vld [vmem:[%s3194_s17 + $0x248] sm:$0xff] }
 0x115   : > { %2432 = vmatprep.subr.bf16.mxu0 %v2431_v15  ;;  %2510 = vmatpush3.bf16.msra.mxu1 %v2507_v14  ;;  %v543_v14 = vld [vmem:[%s3194_s17 + $0x260] sm:$0xff]  ;;  %v542_v15 = vld [vmem:[%s3194_s17 + $0x258] sm:$0xff] }
 0x116   : > { %1311 = vmatmul.mubr.f32.gmra.mrb[10].mxu1 %v482_v21  ;;  %802 = vmatmul.mubr.f32.gmra.mrb[10].mxu0 %v482_v21  ;;  %v551_v21 = vld [vmem:[%s3194_s17 + $0x2a0] sm:$0xff] }
 0x117   : > { %1315 = vmatprep.mubr.f32.mxu1 %v486_v22  ;;  %807 = vmatprep.mubr.f32.mxu0 %v486_v22  ;;  %v555_v22 = vld [vmem:[%s3194_s17 + $0x2c0] sm:$0xff] }
 0x118   : > { %2434 = vmatpush1.bf16.msra.mxu0 %v2433_v23  ;;  %2512 = vmatprep.subr.bf16.mxu1 %v2511_v25  ;;  %v554_v23 = vld [vmem:[%s3194_s17 + $0x2b8] sm:$0xff] }
 0x119   : > { %2436 = vmatprep.subr.bf16.mxu0 %v2435_v26  ;;  %2514 = vmatpush3.bf16.msra.mxu1 %v2511_v25  ;;  %v557_v25 = vld [vmem:[%s3194_s17 + $0x2d0] sm:$0xff] }
 0x11a   : > { %1316 = vmatmul.mubr.f32.gmra.mrb[12].mxu1 %v485_v32  ;;  %808 = vmatmul.mubr.f32.gmra.mrb[12].mxu0 %v485_v32  ;;  %v561_v26 = vld [vmem:[%s3194_s17 + $0x2f0] sm:$0xff]  ;;  %v478_v32 = vld [vmem:[%s3194_s17 + $0x58] sm:$0xff] }
 0x11b   : > { %1320 = vmatprep.mubr.f32.mxu1 %v489_v4  ;;  %813 = vmatprep.mubr.f32.mxu0 %v489_v4  ;;  %v481_v4 = vld [vmem:[%s3194_s17 + $0x70] sm:$0xff] }
 0x11c   : > { %2438 = vmatpush1.bf16.msra.mxu0 %v2437_v33  ;;  %2516 = vmatprep.subr.bf16.mxu1 %v2515_v35  ;;  %v484_v33 = vld [vmem:[%s3194_s17 + $0x88] sm:$0xff] }
 0x11d   : > { %2440 = vmatprep.subr.bf16.mxu0 %v2439_v36  ;;  %2518 = vmatpush3.bf16.msra.mxu1 %v2515_v35  ;;  %v490_v35 = vld [vmem:[%s3194_s17 + $0xb8] sm:$0xff]  ;;  %v493_v36 = vld [vmem:[%s3194_s17 + $0xd0] sm:$0xff] }
 0x11e   : > { %1321 = vmatmul.mubr.f32.gmra.mrb[14].mxu1 %v488_v40  ;;  %814 = vmatmul.mubr.f32.gmra.mrb[14].mxu0 %v488_v40  ;;  %v505_v40 = vld [vmem:[%s3194_s17 + $0x130] sm:$0xff] }
 0x11f   : > { %1325 = vmatprep.mubr.f32.mxu1 %v492_v41  ;;  %819 = vmatprep.mubr.f32.mxu0 %v492_v41  ;;  %v508_v41 = vld [vmem:[%s3194_s17 + $0x148] sm:$0xff] }
 0x120   : > { %2442 = vmatpush1.bf16.msra.mxu0 %v2441_v42  ;;  %2520 = vmatprep.subr.bf16.mxu1 %v2519_v43  ;;  %v511_v42 = vld [vmem:[%s3194_s17 + $0x160] sm:$0xff] }
 0x121   : > { %2522 = vmatpush3.bf16.msra.mxu1 %v2519_v43  ;;  %v514_v43 = vld [vmem:[%s3194_s17 + $0x178] sm:$0xff] }
 0x122   : > { %1326 = vmatmul.mubr.f32.gmra.mrb[16].mxu1 %v491_v44  ;;  %820 = vmatmul.mubr.f32.gmra.mrb[16].mxu0 %v491_v44  ;;  %v517_v44 = vld [vmem:[%s3194_s17 + $0x190] sm:$0xff] }
 0x123   : > { %1330 = vmatprep.mubr.f32.mxu1 %v495_v45  ;;  %825 = vmatprep.mubr.f32.mxu0 %v495_v45  ;;  %v520_v45 = vld [vmem:[%s3194_s17 + $0x1a8] sm:$0xff] }
 0x126   : > { %1331 = vmatmul.mubr.f32.gmra.mrb[18].mxu1 %v494_v46  ;;  %826 = vmatmul.mubr.f32.gmra.mrb[18].mxu0 %v494_v46  ;;  %v523_v46 = vld [vmem:[%s3194_s17 + $0x1c0] sm:$0xff] }
 0x127   : > { %1335 = vmatprep.mubr.f32.mxu1 %v498_v47  ;;  %831 = vmatprep.mubr.f32.mxu0 %v498_v47  ;;  %v526_v47 = vld [vmem:[%s3194_s17 + $0x1d8] sm:$0xff] }
 0x12a   : > { %1336 = vmatmul.mubr.f32.gmra.mrb[20].mxu1 %v497_v48  ;;  %832 = vmatmul.mubr.f32.gmra.mrb[20].mxu0 %v497_v48  ;;  %v529_v48 = vld [vmem:[%s3194_s17 + $0x1f0] sm:$0xff] }
 0x12b   : > { %1340 = vmatprep.mubr.f32.mxu1 %v501_v49  ;;  %837 = vmatprep.mubr.f32.mxu0 %v501_v49  ;;  %v532_v49 = vld [vmem:[%s3194_s17 + $0x208] sm:$0xff] }
 0x12e   : > { %1341 = vmatmul.mubr.f32.gmra.mrb[22].mxu1 %v500_v50  ;;  %838 = vmatmul.mubr.f32.gmra.mrb[22].mxu0 %v500_v50  ;;  %v535_v50 = vld [vmem:[%s3194_s17 + $0x220] sm:$0xff] }
 0x12f   : > { %1345 = vmatprep.mubr.f32.mxu1 %v504_v51  ;;  %843 = vmatprep.mubr.f32.mxu0 %v504_v51  ;;  %v538_v51 = vld [vmem:[%s3194_s17 + $0x238] sm:$0xff] }
 0x132   : > { %1346 = vmatmul.mubr.f32.gmra.mrb[24].mxu1 %v503_v52  ;;  %844 = vmatmul.mubr.f32.gmra.mrb[24].mxu0 %v503_v52  ;;  %v541_v52 = vld [vmem:[%s3194_s17 + $0x250] sm:$0xff] }
 0x133   : > { %1350 = vmatprep.mubr.f32.mxu1 %v507_v53  ;;  %849 = vmatprep.mubr.f32.mxu0 %v507_v53  ;;  %v544_v53 = vld [vmem:[%s3194_s17 + $0x268] sm:$0xff] }
 0x136   : > { %1351 = vmatmul.mubr.f32.gmra.mrb[26].mxu1 %v506_v54  ;;  %850 = vmatmul.mubr.f32.gmra.mrb[26].mxu0 %v506_v54  ;;  %v547_v54 = vld [vmem:[%s3194_s17 + $0x280] sm:$0xff] }
 0x137   : > { %1355 = vmatprep.mubr.f32.mxu1 %v510_v55  ;;  %855 = vmatprep.mubr.f32.mxu0 %v510_v55  ;;  %v550_v55 = vld [vmem:[%s3194_s17 + $0x298] sm:$0xff] }
 0x13a   : > { %1356 = vmatmul.mubr.f32.gmra.mrb[28].mxu1 %v509_v56  ;;  %856 = vmatmul.mubr.f32.gmra.mrb[28].mxu0 %v509_v56  ;;  %v553_v56 = vld [vmem:[%s3194_s17 + $0x2b0] sm:$0xff] }
 0x13b   : > { %1360 = vmatprep.mubr.f32.mxu1 %v513_v57  ;;  %861 = vmatprep.mubr.f32.mxu0 %v513_v57  ;;  %v556_v57 = vld [vmem:[%s3194_s17 + $0x2c8] sm:$0xff] }
 0x13e   : > { %1361 = vmatmul.mubr.f32.gmra.mrb[30].mxu1 %v512_v58  ;;  %862 = vmatmul.mubr.f32.gmra.mrb[30].mxu0 %v512_v58  ;;  %v559_v58 = vld [vmem:[%s3194_s17 + $0x2e0] sm:$0xff] }
 0x13f   : > { %1365 = vmatprep.mubr.f32.mxu1 %v516_v59  ;;  %867 = vmatprep.mubr.f32.mxu0 %v516_v59  ;;  %v562_v59 = vld [vmem:[%s3194_s17 + $0x2f8] sm:$0xff] }
 0x142   : > { %1366 = vmatmul.mubr.f32.gmra.mrb[32].mxu1 %v515_v60  ;;  %868 = vmatmul.mubr.f32.gmra.mrb[32].mxu0 %v515_v60 }
 0x143   : > { %1370 = vmatprep.mubr.f32.mxu1 %v519_v61  ;;  %873 = vmatprep.mubr.f32.mxu0 %v519_v61 }
 0x146   : > { %1371 = vmatmul.mubr.f32.gmra.mrb[34].mxu1 %v518_v62  ;;  %874 = vmatmul.mubr.f32.gmra.mrb[34].mxu0 %v518_v62 }
 0x147   : > { %1375 = vmatprep.mubr.f32.mxu1 %v522_v63  ;;  %879 = vmatprep.mubr.f32.mxu0 %v522_v63 }
 0x14a   : > { %1376 = vmatmul.mubr.f32.gmra.mrb[36].mxu1 %v521_v0  ;;  %880 = vmatmul.mubr.f32.gmra.mrb[36].mxu0 %v521_v0 }
 0x14b   : > { %1380 = vmatprep.mubr.f32.mxu1 %v525_v1  ;;  %885 = vmatprep.mubr.f32.mxu0 %v525_v1 }
 0x14e   : > { %1381 = vmatmul.mubr.f32.gmra.mrb[38].mxu1 %v524_v2  ;;  %886 = vmatmul.mubr.f32.gmra.mrb[38].mxu0 %v524_v2 }
 0x14f   : > { %1385 = vmatprep.mubr.f32.mxu1 %v528_v3  ;;  %891 = vmatprep.mubr.f32.mxu0 %v528_v3 }
 0x152   : > { %1386 = vmatmul.mubr.f32.gmra.mrb[40].mxu1 %v527_v5  ;;  %892 = vmatmul.mubr.f32.gmra.mrb[40].mxu0 %v527_v5 }
 0x153   : > { %1390 = vmatprep.mubr.f32.mxu1 %v531_v6  ;;  %897 = vmatprep.mubr.f32.mxu0 %v531_v6 }
 0x156   : > { %1391 = vmatmul.mubr.f32.gmra.mrb[42].mxu1 %v530_v7  ;;  %898 = vmatmul.mubr.f32.gmra.mrb[42].mxu0 %v530_v7 }
 0x157   : > { %1395 = vmatprep.mubr.f32.mxu1 %v534_v8  ;;  %903 = vmatprep.mubr.f32.mxu0 %v534_v8 }
 0x15a   : > { %1396 = vmatmul.mubr.f32.gmra.mrb[44].mxu1 %v533_v9  ;;  %904 = vmatmul.mubr.f32.gmra.mrb[44].mxu0 %v533_v9 }
 0x15b   : > { %1400 = vmatprep.mubr.f32.mxu1 %v537_v10  ;;  %909 = vmatprep.mubr.f32.mxu0 %v537_v10 }
 0x15e   : > { %1401 = vmatmul.mubr.f32.gmra.mrb[46].mxu1 %v536_v11  ;;  %910 = vmatmul.mubr.f32.gmra.mrb[46].mxu0 %v536_v11 }
 0x15f   : > { %1405 = vmatprep.mubr.f32.mxu1 %v540_v12  ;;  %915 = vmatprep.mubr.f32.mxu0 %v540_v12 }
 0x162   : > { %1406 = vmatmul.mubr.f32.gmra.mrb[48].mxu1 %v539_v13  ;;  %916 = vmatmul.mubr.f32.gmra.mrb[48].mxu0 %v539_v13 }
 0x163   : > { %1410 = vmatprep.mubr.f32.mxu1 %v543_v14  ;;  %921 = vmatprep.mubr.f32.mxu0 %v543_v14 }
 0x166   : > { %1411 = vmatmul.mubr.f32.gmra.mrb[50].mxu1 %v542_v15  ;;  %922 = vmatmul.mubr.f32.gmra.mrb[50].mxu0 %v542_v15 }
 0x167   : > { %1415 = vmatprep.mubr.f32.mxu1 %v546_v16  ;;  %927 = vmatprep.mubr.f32.mxu0 %v546_v16 }
 0x16a   : > { %1416 = vmatmul.mubr.f32.gmra.mrb[52].mxu1 %v545_v17  ;;  %928 = vmatmul.mubr.f32.gmra.mrb[52].mxu0 %v545_v17 }
 0x16b   : > { %1420 = vmatprep.mubr.f32.mxu1 %v549_v18  ;;  %933 = vmatprep.mubr.f32.mxu0 %v549_v18 }
 0x16e   : > { %1421 = vmatmul.mubr.f32.gmra.mrb[54].mxu1 %v548_v19  ;;  %934 = vmatmul.mubr.f32.gmra.mrb[54].mxu0 %v548_v19 }
 0x16f   : > { %1425 = vmatprep.mubr.f32.mxu1 %v552_v20  ;;  %939 = vmatprep.mubr.f32.mxu0 %v552_v20 }
 0x172   : > { %1426 = vmatmul.mubr.f32.gmra.mrb[56].mxu1 %v551_v21  ;;  %940 = vmatmul.mubr.f32.gmra.mrb[56].mxu0 %v551_v21 }
 0x173   : > { %1430 = vmatprep.mubr.f32.mxu1 %v555_v22  ;;  %945 = vmatprep.mubr.f32.mxu0 %v555_v22 }
 0x176   : > { %1431 = vmatmul.mubr.f32.gmra.mrb[58].mxu1 %v554_v23  ;;  %946 = vmatmul.mubr.f32.gmra.mrb[58].mxu0 %v554_v23 }
 0x177   : > { %1435 = vmatprep.mubr.f32.mxu1 %v558_v24  ;;  %951 = vmatprep.mubr.f32.mxu0 %v558_v24 }
 0x17a   : > { %1436 = vmatmul.mubr.f32.gmra.mrb[60].mxu1 %v557_v25  ;;  %952 = vmatmul.mubr.f32.gmra.mrb[60].mxu0 %v557_v25 }
 0x17b   : > { %1440 = vmatprep.mubr.f32.mxu1 %v561_v26  ;;  %957 = vmatprep.mubr.f32.mxu0 %v561_v26 }
 0x17e   : > { %1441 = vmatmul.mubr.f32.gmra.mrb[62].mxu1 %v560_v27  ;;  %958 = vmatmul.mubr.f32.gmra.mrb[62].mxu0 %v560_v27 }
 0x17f   : > { %2299 = vmatprep.mubr.f32.mxu1 %v469_v28  ;;  %1028 = vmatprep.mubr.f32.mxu0 %v2951_v29 }
 0x182   : > { %2300 = vmatmul.mubr.f32.vlgmr.msra.gmra.mrb[64].mxu1 %v472_v30  ;;  %1029 = vmatmul.mubr.f32.vlgmr.msra.gmra.mrb[0].mxu0 %v469_v28 }
 0x183   : > { %2302 = vmatprep.mubr.f32.mxu1 %v475_v31  ;;  %1034 = vmatprep.mubr.f32.mxu0 %v2951_v29 }
 0x186   : > { %2303 = vmatmul.mubr.f32.gmra.mrb[66].mxu1 %v478_v32  ;;  %1035 = vmatmul.mubr.f32.gmra.mrb[2].mxu0 %v472_v30 }
 0x187   : > { %2305 = vmatprep.mubr.f32.mxu1 %v481_v4  ;;  %1040 = vmatprep.mubr.f32.mxu0 %v2951_v29 }
 0x18a   : > { %2306 = vmatmul.mubr.f32.gmra.mrb[68].mxu1 %v484_v33  ;;  %1041 = vmatmul.mubr.f32.gmra.mrb[4].mxu0 %v475_v31 }
 0x18b   : > { %2308 = vmatprep.mubr.f32.mxu1 %v487_v34  ;;  %1046 = vmatprep.mubr.f32.mxu0 %v2951_v29 }
 0x18e   : > { %2309 = vmatmul.mubr.f32.gmra.mrb[70].mxu1 %v490_v35  ;;  %1047 = vmatmul.mubr.f32.gmra.mrb[6].mxu0 %v478_v32 }
 0x18f   : > { %2311 = vmatprep.mubr.f32.mxu1 %v493_v36  ;;  %1052 = vmatprep.mubr.f32.mxu0 %v2951_v29 }
 0x192   : > { %2312 = vmatmul.mubr.f32.gmra.mrb[72].mxu1 %v496_v37  ;;  %1053 = vmatmul.mubr.f32.gmra.mrb[8].mxu0 %v481_v4 }
 0x193   : > { %2314 = vmatprep.mubr.f32.mxu1 %v499_v38  ;;  %1058 = vmatprep.mubr.f32.mxu0 %v2951_v29 }
 0x196   : > { %2315 = vmatmul.mubr.f32.gmra.mrb[74].mxu1 %v502_v39  ;;  %1059 = vmatmul.mubr.f32.gmra.mrb[10].mxu0 %v484_v33 }
 0x197   : > { %2317 = vmatprep.mubr.f32.mxu1 %v505_v40  ;;  %1064 = vmatprep.mubr.f32.mxu0 %v2951_v29 }
 0x19a   : > { %2318 = vmatmul.mubr.f32.gmra.mrb[76].mxu1 %v508_v41  ;;  %1065 = vmatmul.mubr.f32.gmra.mrb[12].mxu0 %v487_v34 }
 0x19b   : > { %2320 = vmatprep.mubr.f32.mxu1 %v511_v42  ;;  %1070 = vmatprep.mubr.f32.mxu0 %v2951_v29 }
 0x19e   : > { %2321 = vmatmul.mubr.f32.gmra.mrb[78].mxu1 %v514_v43  ;;  %1071 = vmatmul.mubr.f32.gmra.mrb[14].mxu0 %v490_v35 }
 0x19f   : > { %2323 = vmatprep.mubr.f32.mxu1 %v517_v44  ;;  %1076 = vmatprep.mubr.f32.mxu0 %v2951_v29 }
 0x1a2   : > { %2324 = vmatmul.mubr.f32.gmra.mrb[80].mxu1 %v520_v45  ;;  %1077 = vmatmul.mubr.f32.gmra.mrb[16].mxu0 %v493_v36 }
 0x1a3   : > { %2326 = vmatprep.mubr.f32.mxu1 %v523_v46  ;;  %1082 = vmatprep.mubr.f32.mxu0 %v2951_v29 }
 0x1a6   : > { %2327 = vmatmul.mubr.f32.gmra.mrb[82].mxu1 %v526_v47  ;;  %1083 = vmatmul.mubr.f32.gmra.mrb[18].mxu0 %v496_v37 }
 0x1a7   : > { %2329 = vmatprep.mubr.f32.mxu1 %v529_v48  ;;  %1088 = vmatprep.mubr.f32.mxu0 %v2951_v29 }
 0x1aa   : > { %2330 = vmatmul.mubr.f32.gmra.mrb[84].mxu1 %v532_v49  ;;  %1089 = vmatmul.mubr.f32.gmra.mrb[20].mxu0 %v499_v38 }
 0x1ab   : > { %2332 = vmatprep.mubr.f32.mxu1 %v535_v50  ;;  %1094 = vmatprep.mubr.f32.mxu0 %v2951_v29 }
 0x1ae   : > { %2333 = vmatmul.mubr.f32.gmra.mrb[86].mxu1 %v538_v51  ;;  %1095 = vmatmul.mubr.f32.gmra.mrb[22].mxu0 %v502_v39 }
 0x1af   : > { %2335 = vmatprep.mubr.f32.mxu1 %v541_v52  ;;  %1100 = vmatprep.mubr.f32.mxu0 %v2951_v29 }
 0x1b2   : > { %2336 = vmatmul.mubr.f32.gmra.mrb[88].mxu1 %v544_v53  ;;  %1101 = vmatmul.mubr.f32.gmra.mrb[24].mxu0 %v505_v40 }
 0x1b3   : > { %2338 = vmatprep.mubr.f32.mxu1 %v547_v54  ;;  %1106 = vmatprep.mubr.f32.mxu0 %v2951_v29 }
 0x1b6   : > { %2339 = vmatmul.mubr.f32.gmra.mrb[90].mxu1 %v550_v55  ;;  %1107 = vmatmul.mubr.f32.gmra.mrb[26].mxu0 %v508_v41 }
 0x1b7   : > { %2341 = vmatprep.mubr.f32.mxu1 %v553_v56  ;;  %1112 = vmatprep.mubr.f32.mxu0 %v2951_v29 }
 0x1ba   : > { %2342 = vmatmul.mubr.f32.gmra.mrb[92].mxu1 %v556_v57  ;;  %1113 = vmatmul.mubr.f32.gmra.mrb[28].mxu0 %v511_v42 }
 0x1bb   : > { %2344 = vmatprep.mubr.f32.mxu1 %v559_v58  ;;  %1118 = vmatprep.mubr.f32.mxu0 %v2951_v29 }
 0x1be   : > { %2345 = vmatmul.mubr.f32.gmra.mrb[94].mxu1 %v562_v59  ;;  %1119 = vmatmul.mubr.f32.gmra.mrb[30].mxu0 %v514_v43 }
 0x1bf   : > { %1124 = vmatprep.mubr.f32.mxu0 %v2951_v29 }
 0x1c2   : > { %1125 = vmatmul.mubr.f32.gmra.mrb[32].mxu0 %v517_v44 }
 0x1c3   : > { %1130 = vmatprep.mubr.f32.mxu0 %v2951_v29 }
 0x1c6   : > { %1131 = vmatmul.mubr.f32.gmra.mrb[34].mxu0 %v520_v45 }
 0x1c7   : > { %1136 = vmatprep.mubr.f32.mxu0 %v2951_v29 }
 0x1ca   : > { %1137 = vmatmul.mubr.f32.gmra.mrb[36].mxu0 %v523_v46 }
 0x1cb   : > { %1142 = vmatprep.mubr.f32.mxu0 %v2951_v29 }
 0x1ce   : > { %1143 = vmatmul.mubr.f32.gmra.mrb[38].mxu0 %v526_v47 }
 0x1cf   : > { %1148 = vmatprep.mubr.f32.mxu0 %v2951_v29 }
 0x1d2   : > { %1149 = vmatmul.mubr.f32.gmra.mrb[40].mxu0 %v529_v48 }
 0x1d3   : > { %1154 = vmatprep.mubr.f32.mxu0 %v2951_v29 }
 0x1d5   : > { %v3588_v60 = vpop.f32.mrb[0].mxu1 }
 0x1d6   : > { %1155 = vmatmul.mubr.f32.gmra.mrb[42].mxu0 %v532_v49  ;;  %v1289_v61 = vpop.f32.mrb[1].mxu1 }
 0x1d7   : > { %1160 = vmatprep.mubr.f32.mxu0 %v2951_v29  ;;  %v371_v61 = vld [vmem:[#allocation2] sm:$0xff] }
 0x1d9   : > { %v3591_v62 = vpop.f32.mrb[2].mxu1 }
 0x1da   : > { %1161 = vmatmul.mubr.f32.gmra.mrb[44].mxu0 %v535_v50  ;;  %v1294_v63 = vpop.f32.mrb[3].mxu1 }
 0x1db   : > { %1166 = vmatprep.mubr.f32.mxu0 %v2951_v29  ;;  %v372_v63 = vld [vmem:[#allocation2 + $0x8] sm:$0xff] }
 0x1dd   : > { %v3594_v0 = vpop.f32.mrb[4].mxu1 }
 0x1de   : > { %1167 = vmatmul.mubr.f32.gmra.mrb[46].mxu0 %v538_v51  ;;  %v1299_v1 = vpop.f32.mrb[5].mxu1 }
 0x1df   : > { %1172 = vmatprep.mubr.f32.mxu0 %v2951_v29  ;;  %v376_v1 = vld [vmem:[#allocation2 + $0x28] sm:$0xff] }
 0x1e1   : > { %v3597_v2 = vpop.f32.mrb[6].mxu1 }
 0x1e2   : > { %1173 = vmatmul.mubr.f32.gmra.mrb[48].mxu0 %v541_v52  ;;  %v1304_v3 = vpop.f32.mrb[7].mxu1 }
 0x1e3   : > { %1178 = vmatprep.mubr.f32.mxu0 %v2951_v29 }
 0x1e5   : > { %v3600_v5 = vpop.f32.mrb[8].mxu1 }
 0x1e6   : > { %1179 = vmatmul.mubr.f32.gmra.mrb[50].mxu0 %v544_v53  ;;  %v1309_v6 = vpop.f32.mrb[9].mxu1 }
 0x1e7   : > { %1184 = vmatprep.mubr.f32.mxu0 %v2951_v29 }
 0x1e9   : > { %v3603_v7 = vpop.f32.mrb[10].mxu1 }
 0x1ea   : > { %1185 = vmatmul.mubr.f32.gmra.mrb[52].mxu0 %v547_v54  ;;  %v1314_v8 = vpop.f32.mrb[11].mxu1 }
 0x1eb   : > { %1190 = vmatprep.mubr.f32.mxu0 %v2951_v29 }
 0x1ed   : > { %v3606_v9 = vpop.f32.mrb[12].mxu1 }
 0x1ee   : > { %1191 = vmatmul.mubr.f32.gmra.mrb[54].mxu0 %v550_v55  ;;  %v1319_v10 = vpop.f32.mrb[13].mxu1 }
 0x1ef   : > { %1196 = vmatprep.mubr.f32.mxu0 %v2951_v29 }
 0x1f1   : > { %v3609_v11 = vpop.f32.mrb[14].mxu1 }
 0x1f2   : > { %1197 = vmatmul.mubr.f32.gmra.mrb[56].mxu0 %v553_v56  ;;  %v1324_v12 = vpop.f32.mrb[15].mxu1 }
 0x1f3   : > { %1202 = vmatprep.mubr.f32.mxu0 %v2951_v29  ;;  %v373_v12 = vld [vmem:[#allocation2 + $0x10] sm:$0xff] }
 0x1f5   : > { %v3612_v13 = vpop.f32.mrb[16].mxu1 }
 0x1f6   : > { %1203 = vmatmul.mubr.f32.gmra.mrb[58].mxu0 %v556_v57  ;;  %v1329_v14 = vpop.f32.mrb[17].mxu1 }
 0x1f7   : > { %1208 = vmatprep.mubr.f32.mxu0 %v2951_v29 }
 0x1f9   : > { %v3615_v15 = vpop.f32.mrb[18].mxu1 }
 0x1fa   : > { %1209 = vmatmul.mubr.f32.gmra.mrb[60].mxu0 %v559_v58  ;;  %v1334_v16 = vpop.f32.mrb[19].mxu1 }
 0x1fb   : > { %1214 = vmatprep.mubr.f32.mxu0 %v2951_v29 }
 0x1fd   : > { %v3618_v17 = vpop.f32.mrb[20].mxu1 }
 0x1fe   : > { %1215 = vmatmul.mubr.f32.gmra.mrb[62].mxu0 %v562_v59  ;;  %v1339_v18 = vpop.f32.mrb[21].mxu1 }
 0x201   : > { %v3620_v19 = vpop.f32.mrb[22].mxu1 }
 0x202   : > { %v1344_v20 = vpop.f32.mrb[23].mxu1 }
 0x205   : > { %v3622_v21 = vpop.f32.mrb[24].mxu1 }
 0x206   : > { %v1349_v22 = vpop.f32.mrb[25].mxu1 }
 0x207   : > { %v374_v22 = vld [vmem:[#allocation2 + $0x18] sm:$0xff] }
 0x209   : > { %v3624_v23 = vpop.f32.mrb[26].mxu1 }
 0x20a   : > { %v1354_v24 = vpop.f32.mrb[27].mxu1 }
 0x20d   : > { %v3626_v25 = vpop.f32.mrb[28].mxu1 }
 0x20e   : > { %v1359_v26 = vpop.f32.mrb[29].mxu1 }
 0x20f   : > { %v375_v26 = vld [vmem:[#allocation2 + $0x20] sm:$0xff] }
 0x211   : > { %v3628_v27 = vpop.f32.mrb[30].mxu1 }
 0x212   : > { %v1364_v28 = vpop.f32.mrb[31].mxu1 }
 0x215   : > { %v3630_v29 = vpop.f32.mrb[32].mxu1 }
 0x216   : > { %v1369_v30 = vpop.f32.mrb[33].mxu1 }
 0x217   : > { %v382_v30 = vld [vmem:[#allocation2 + $0x58] sm:$0xff] }
 0x219   : > { %v3632_v31 = vpop.f32.mrb[34].mxu1 }
 0x21a   : > { %v1374_v32 = vpop.f32.mrb[35].mxu1 }
 0x21d   : > { %v3634_v4 = vpop.f32.mrb[36].mxu1 }
 0x21e   : > { %v1379_v33 = vpop.f32.mrb[37].mxu1 }
 0x221   : > { %v3636_v34 = vpop.f32.mrb[38].mxu1 }
 0x222   : > { %v1384_v35 = vpop.f32.mrb[39].mxu1 }
 0x225   : > { %v3638_v36 = vpop.f32.mrb[40].mxu1 }
 0x226   : > { %v1389_v37 = vpop.f32.mrb[41].mxu1 }
 0x227   : > { %v379_v37 = vld [vmem:[#allocation2 + $0x40] sm:$0xff] }
 0x229   : > { %v3640_v38 = vpop.f32.mrb[42].mxu1 }
 0x22a   : > { %v1394_v39 = vpop.f32.mrb[43].mxu1 }
 0x22d   : > { %v3642_v40 = vpop.f32.mrb[44].mxu1 }
 0x22e   : > { %v1399_v41 = vpop.f32.mrb[45].mxu1 }
 0x231   : > { %v3644_v42 = vpop.f32.mrb[46].mxu1 }
 0x232   : > { %v1404_v43 = vpop.f32.mrb[47].mxu1 }
 0x235   : > { %v3646_v44 = vpop.f32.mrb[48].mxu1 }
 0x236   : > { %v1409_v45 = vpop.f32.mrb[49].mxu1 }
 0x237   : > { %v377_v45 = vld [vmem:[#allocation2 + $0x30] sm:$0xff] }
 0x239   : > { %v3648_v46 = vpop.f32.mrb[50].mxu1 }
 0x23a   : > { %v1414_v47 = vpop.f32.mrb[51].mxu1 }
 0x23d   : > { %v3650_v48 = vpop.f32.mrb[52].mxu1 }
 0x23e   : > { %v1419_v49 = vpop.f32.mrb[53].mxu1 }
 0x23f   : > { %v378_v49 = vld [vmem:[#allocation2 + $0x38] sm:$0xff] }
 0x241   : > { %v3652_v50 = vpop.f32.mrb[54].mxu1 }
 0x242   : > { %v1424_v51 = vpop.f32.mrb[55].mxu1 }
 0x245   : > { %v3654_v52 = vpop.f32.mrb[56].mxu1 }
 0x246   : > { %v1429_v53 = vpop.f32.mrb[57].mxu1 }
 0x247   : > { %v388_v53 = vld [vmem:[#allocation2 + $0x88] sm:$0xff] }
 0x249   : > { %v3656_v54 = vpop.f32.mrb[58].mxu1 }
 0x24a   : > { %v1434_v55 = vpop.f32.mrb[59].mxu1 }
 0x24d   : > { %v3658_v56 = vpop.f32.mrb[60].mxu1 }
 0x24e   : > { %v1439_v57 = vpop.f32.mrb[61].mxu1 }
 0x251   : > { %v3660_v58 = vpop.f32.mrb[62].mxu1 }
 0x252   : > { %v1444_v59 = vpop.f32.mrb[63].mxu1 }
 0x255   : > { %v2301_v3 = vpop.f32.mrb[64].mxu1  ;;  %v1030_v6 = vpop.f32.mrb[0].mxu0 }
 0x256   : > { %v1518_v8 = vadd.f32 %v2301_v3, %v3591_v62  ;;  %v1671_v10 = vadd.f32 %v1030_v6, %v371_v61  ;;  %v1512_v14 = vpop.f32.mrb[65].mxu1  ;;  %v1032_v16 = vpop.f32.mrb[1].mxu0  ;;  %v385_v61 = vld [vmem:[#allocation2 + $0x70] sm:$0xff]  ;;  %v380_v6 = vld [vmem:[#allocation2 + $0x48] sm:$0xff] }
 0x257   : > { %v1513_v18 = vadd.f32 %v1512_v14, %v3588_v60  ;;  %v1672_v20 = vadd.f32 %v1032_v16, %v372_v63  ;;  %v394_v14 = vld [vmem:[#allocation2 + $0xb8] sm:$0xff] }
 0x258   : > { %v1676_v24 = vadd.f32 %v1518_v8, %v376_v1  ;;  %1767 = vst [vmem:[#allocation2] sm:$0xff] %v1671_v10  ;;  %v381_v10 = vld [vmem:[#allocation2 + $0x50] sm:$0xff] }
 0x259   : > { %v1673_v28 = vadd.f32 %v1513_v18, %v373_v12  ;;  %1768 = vst [vmem:[#allocation2 + $0x8] sm:$0xff] %v1672_v20  ;;  %v2304_v32 = vpop.f32.mrb[66].mxu1  ;;  %v1036_v33 = vpop.f32.mrb[2].mxu0 }
 0x25a   : > { %1772 = vst [vmem:[#allocation2 + $0x28] sm:$0xff] %v1676_v24  ;;  %v1528_v35 = vadd.f32 %v2304_v32, %v3597_v2  ;;  %v1674_v62 = vadd.f32 %v1036_v33, %v374_v22  ;;  %v1522_v39 = vpop.f32.mrb[67].mxu1  ;;  %v1038_v41 = vpop.f32.mrb[3].mxu0  ;;  %v391_v22 = vld [vmem:[#allocation2 + $0xa0] sm:$0xff]  ;;  %v384_v33 = vld [vmem:[#allocation2 + $0x68] sm:$0xff] }
 0x25b   : > { %1769 = vst [vmem:[#allocation2 + $0x10] sm:$0xff] %v1673_v28  ;;  %v1523_v60 = vadd.f32 %v1522_v39, %v3594_v0  ;;  %v1675_v43 = vadd.f32 %v1038_v41, %v375_v26 }
 0x25c   : > { %v1682_v47 = vadd.f32 %v1528_v35, %v382_v30  ;;  %1770 = vst [vmem:[#allocation2 + $0x18] sm:$0xff] %v1674_v62  ;;  %v383_v30 = vld [vmem:[#allocation2 + $0x60] sm:$0xff]  ;;  %v400_v62 = vld [vmem:[#allocation2 + $0xe8] sm:$0xff] }
 0x25d   : > { %v1679_v51 = vadd.f32 %v1523_v60, %v379_v37  ;;  %1771 = vst [vmem:[#allocation2 + $0x20] sm:$0xff] %v1675_v43  ;;  %v2307_v55 = vpop.f32.mrb[68].mxu1  ;;  %v1042_v57 = vpop.f32.mrb[4].mxu0  ;;  %v397_v60 = vld [vmem:[#allocation2 + $0xd0] sm:$0xff] }
 0x25e   : > { %1778 = vst [vmem:[#allocation2 + $0x58] sm:$0xff] %v1682_v47  ;;  %v1538_v2 = vadd.f32 %v2307_v55, %v3603_v7  ;;  %v1677_v59 = vadd.f32 %v1042_v57, %v377_v45  ;;  %v1532_v63 = vpop.f32.mrb[69].mxu1  ;;  %v1044_v1 = vpop.f32.mrb[5].mxu0  ;;  %v406_v57 = vld [vmem:[#allocation2 + $0x118] sm:$0xff] }
 0x25f   : > { %1775 = vst [vmem:[#allocation2 + $0x40] sm:$0xff] %v1679_v51  ;;  %v1533_v0 = vadd.f32 %v1532_v63, %v3600_v5  ;;  %v1678_v3 = vadd.f32 %v1044_v1, %v378_v49  ;;  %v386_v49 = vld [vmem:[#allocation2 + $0x78] sm:$0xff]  ;;  %v403_v63 = vld [vmem:[#allocation2 + $0x100] sm:$0xff] }
 0x260   : > { %v1688_v8 = vadd.f32 %v1538_v2, %v388_v53  ;;  %1773 = vst [vmem:[#allocation2 + $0x30] sm:$0xff] %v1677_v59  ;;  %v387_v53 = vld [vmem:[#allocation2 + $0x80] sm:$0xff] }
 0x261   : > { %v1685_v12 = vadd.f32 %v1533_v0, %v385_v61  ;;  %1774 = vst [vmem:[#allocation2 + $0x38] sm:$0xff] %v1678_v3  ;;  %v2310_v16 = vpop.f32.mrb[70].mxu1  ;;  %v1048_v18 = vpop.f32.mrb[6].mxu0 }
 0x262   : > { %1784 = vst [vmem:[#allocation2 + $0x88] sm:$0xff] %v1688_v8  ;;  %v1548_v7 = vadd.f32 %v2310_v16, %v3609_v11  ;;  %v1680_v20 = vadd.f32 %v1048_v18, %v380_v6  ;;  %v1542_v24 = vpop.f32.mrb[71].mxu1  ;;  %v1050_v26 = vpop.f32.mrb[7].mxu0  ;;  %v389_v6 = vld [vmem:[#allocation2 + $0x90] sm:$0xff] }
 0x263   : > { %1781 = vst [vmem:[#allocation2 + $0x70] sm:$0xff] %v1685_v12  ;;  %v1543_v5 = vadd.f32 %v1542_v24, %v3606_v9  ;;  %v1681_v28 = vadd.f32 %v1050_v26, %v381_v10  ;;  %v390_v10 = vld [vmem:[#allocation2 + $0x98] sm:$0xff] }
 0x264   : > { %v1694_v32 = vadd.f32 %v1548_v7, %v394_v14  ;;  %1776 = vst [vmem:[#allocation2 + $0x48] sm:$0xff] %v1680_v20  ;;  %v412_v14 = vld [vmem:[#allocation2 + $0x148] sm:$0xff]  ;;  %v409_v20 = vld [vmem:[#allocation2 + $0x130] sm:$0xff] }
 0x265   : > { %v1691_v35 = vadd.f32 %v1543_v5, %v391_v22  ;;  %1777 = vst [vmem:[#allocation2 + $0x50] sm:$0xff] %v1681_v28  ;;  %v2313_v37 = vpop.f32.mrb[72].mxu1  ;;  %v1054_v39 = vpop.f32.mrb[8].mxu0  ;;  %v392_v5 = vld [vmem:[#allocation2 + $0xa8] sm:$0xff] }
 0x266   : > { %1790 = vst [vmem:[#allocation2 + $0xb8] sm:$0xff] %v1694_v32  ;;  %v1558_v11 = vadd.f32 %v2313_v37, %v3615_v15  ;;  %v1683_v41 = vadd.f32 %v1054_v39, %v383_v30  ;;  %v1552_v43 = vpop.f32.mrb[73].mxu1  ;;  %v1056_v45 = vpop.f32.mrb[9].mxu0  ;;  %v393_v30 = vld [vmem:[#allocation2 + $0xb0] sm:$0xff]  ;;  %v415_v39 = vld [vmem:[#allocation2 + $0x160] sm:$0xff] }
 0x267   : > { %1787 = vst [vmem:[#allocation2 + $0xa0] sm:$0xff] %v1691_v35  ;;  %v1553_v9 = vadd.f32 %v1552_v43, %v3612_v13  ;;  %v1684_v47 = vadd.f32 %v1056_v45, %v384_v33  ;;  %v418_v33 = vld [vmem:[#allocation2 + $0x178] sm:$0xff]  ;;  %v395_v43 = vld [vmem:[#allocation2 + $0xc0] sm:$0xff] }
 0x268   : > { %v1700_v51 = vadd.f32 %v1558_v11, %v400_v62  ;;  %1779 = vst [vmem:[#allocation2 + $0x60] sm:$0xff] %v1683_v41 }
 0x269   : > { %v1697_v55 = vadd.f32 %v1553_v9, %v397_v60  ;;  %1780 = vst [vmem:[#allocation2 + $0x68] sm:$0xff] %v1684_v47  ;;  %v2316_v2 = vpop.f32.mrb[74].mxu1  ;;  %v1060_v59 = vpop.f32.mrb[10].mxu0  ;;  %v396_v9 = vld [vmem:[#allocation2 + $0xc8] sm:$0xff] }
 0x26a   : > { %1796 = vst [vmem:[#allocation2 + $0xe8] sm:$0xff] %v1700_v51  ;;  %v1568_v15 = vadd.f32 %v2316_v2, %v3620_v19  ;;  %v1686_v61 = vadd.f32 %v1060_v59, %v386_v49  ;;  %v1562_v1 = vpop.f32.mrb[75].mxu1  ;;  %v1062_v0 = vpop.f32.mrb[11].mxu0  ;;  %v424_v49 = vld [vmem:[#allocation2 + $0x1a8] sm:$0xff] }
 0x26b   : > { %1793 = vst [vmem:[#allocation2 + $0xd0] sm:$0xff] %v1697_v55  ;;  %v1563_v13 = vadd.f32 %v1562_v1, %v3618_v17  ;;  %v1687_v3 = vadd.f32 %v1062_v0, %v387_v53  ;;  %v399_v1 = vld [vmem:[#allocation2 + $0xe0] sm:$0xff] }
 0x26c   : > { %v1706_v8 = vadd.f32 %v1568_v15, %v406_v57  ;;  %1782 = vst [vmem:[#allocation2 + $0x78] sm:$0xff] %v1686_v61  ;;  %v421_v57 = vld [vmem:[#allocation2 + $0x190] sm:$0xff]  ;;  %v398_v61 = vld [vmem:[#allocation2 + $0xd8] sm:$0xff] }
 0x26d   : > { %v1703_v12 = vadd.f32 %v1563_v13, %v403_v63  ;;  %1783 = vst [vmem:[#allocation2 + $0x80] sm:$0xff] %v1687_v3  ;;  %v2319_v16 = vpop.f32.mrb[76].mxu1  ;;  %v1066_v18 = vpop.f32.mrb[12].mxu0  ;;  %v430_v13 = vld [vmem:[#allocation2 + $0x1d8] sm:$0xff] }
 0x26e   : > { %1802 = vst [vmem:[#allocation2 + $0x118] sm:$0xff] %v1706_v8  ;;  %v1578_v19 = vadd.f32 %v2319_v16, %v3624_v23  ;;  %v1689_v7 = vadd.f32 %v1066_v18, %v389_v6  ;;  %v1572_v22 = vpop.f32.mrb[77].mxu1  ;;  %v1068_v24 = vpop.f32.mrb[13].mxu0  ;;  %v401_v18 = vld [vmem:[#allocation2 + $0xf0] sm:$0xff] }
 0x26f   : > { %1799 = vst [vmem:[#allocation2 + $0x100] sm:$0xff] %v1703_v12  ;;  %v1573_v17 = vadd.f32 %v1572_v22, %v3622_v21  ;;  %v1690_v26 = vadd.f32 %v1068_v24, %v390_v10  ;;  %v427_v10 = vld [vmem:[#allocation2 + $0x1c0] sm:$0xff]  ;;  %v436_v22 = vld [vmem:[#allocation2 + $0x208] sm:$0xff] }
 0x270   : > { %v1712_v28 = vadd.f32 %v1578_v19, %v412_v14  ;;  %1785 = vst [vmem:[#allocation2 + $0x90] sm:$0xff] %v1689_v7  ;;  %v402_v7 = vld [vmem:[#allocation2 + $0xf8] sm:$0xff] }
 0x271   : > { %v1709_v32 = vadd.f32 %v1573_v17, %v409_v20  ;;  %1786 = vst [vmem:[#allocation2 + $0x98] sm:$0xff] %v1690_v26  ;;  %v2322_v35 = vpop.f32.mrb[78].mxu1  ;;  %v1072_v62 = vpop.f32.mrb[14].mxu0 }
 0x272   : > { %1808 = vst [vmem:[#allocation2 + $0x148] sm:$0xff] %v1712_v28  ;;  %v1588_v23 = vadd.f32 %v2322_v35, %v3628_v27  ;;  %v1692_v37 = vadd.f32 %v1072_v62, %v392_v5  ;;  %v1582_v11 = vpop.f32.mrb[79].mxu1  ;;  %v1074_v41 = vpop.f32.mrb[15].mxu0  ;;  %v433_v5 = vld [vmem:[#allocation2 + $0x1f0] sm:$0xff] }
 0x273   : > { %1805 = vst [vmem:[#allocation2 + $0x130] sm:$0xff] %v1709_v32  ;;  %v1583_v21 = vadd.f32 %v1582_v11, %v3626_v25  ;;  %v1693_v60 = vadd.f32 %v1074_v41, %v393_v30  ;;  %v405_v62 = vld [vmem:[#allocation2 + $0x110] sm:$0xff] }
 0x274   : > { %v1718_v45 = vadd.f32 %v1588_v23, %v418_v33  ;;  %1788 = vst [vmem:[#allocation2 + $0xa8] sm:$0xff] %v1692_v37  ;;  %v404_v33 = vld [vmem:[#allocation2 + $0x108] sm:$0xff]  ;;  %v442_v37 = vld [vmem:[#allocation2 + $0x238] sm:$0xff] }
 0x275   : > { %v1715_v47 = vadd.f32 %v1583_v21, %v415_v39  ;;  %1789 = vst [vmem:[#allocation2 + $0xb0] sm:$0xff] %v1693_v60  ;;  %v2325_v51 = vpop.f32.mrb[80].mxu1  ;;  %v1078_v53 = vpop.f32.mrb[16].mxu0  ;;  %v439_v21 = vld [vmem:[#allocation2 + $0x220] sm:$0xff] }
 0x276   : > { %1814 = vst [vmem:[#allocation2 + $0x178] sm:$0xff] %v1718_v45  ;;  %v1598_v27 = vadd.f32 %v2325_v51, %v3632_v31  ;;  %v1695_v55 = vadd.f32 %v1078_v53, %v395_v43  ;;  %v1592_v2 = vpop.f32.mrb[81].mxu1  ;;  %v1080_v59 = vpop.f32.mrb[17].mxu0  ;;  %v448_v53 = vld [vmem:[#allocation2 + $0x268] sm:$0xff] }
 0x277   : > { %1811 = vst [vmem:[#allocation2 + $0x160] sm:$0xff] %v1715_v47  ;;  %v1593_v25 = vadd.f32 %v1592_v2, %v3630_v29  ;;  %v1696_v15 = vadd.f32 %v1080_v59, %v396_v9  ;;  %v407_v9 = vld [vmem:[#allocation2 + $0x120] sm:$0xff]  ;;  %v445_v2 = vld [vmem:[#allocation2 + $0x250] sm:$0xff] }
 0x278   : > { %v1724_v63 = vadd.f32 %v1598_v27, %v424_v49  ;;  %1791 = vst [vmem:[#allocation2 + $0xc0] sm:$0xff] %v1695_v55  ;;  %v408_v49 = vld [vmem:[#allocation2 + $0x128] sm:$0xff] }
 0x279   : > { %v1721_v0 = vadd.f32 %v1593_v25, %v421_v57  ;;  %1792 = vst [vmem:[#allocation2 + $0xc8] sm:$0xff] %v1696_v15  ;;  %v2328_v3 = vpop.f32.mrb[82].mxu1  ;;  %v1084_v6 = vpop.f32.mrb[18].mxu0 }
 0x27a   : > { %1820 = vst [vmem:[#allocation2 + $0x1a8] sm:$0xff] %v1724_v63  ;;  %v1608_v31 = vadd.f32 %v2328_v3, %v3636_v34  ;;  %v1698_v8 = vadd.f32 %v1084_v6, %v398_v61  ;;  %v1602_v12 = vpop.f32.mrb[83].mxu1  ;;  %v1086_v14 = vpop.f32.mrb[19].mxu0  ;;  %v410_v61 = vld [vmem:[#allocation2 + $0x138] sm:$0xff] }
 0x27b   : > { %1817 = vst [vmem:[#allocation2 + $0x190] sm:$0xff] %v1721_v0  ;;  %v1603_v29 = vadd.f32 %v1602_v12, %v3634_v4  ;;  %v1699_v16 = vadd.f32 %v1086_v14, %v399_v1  ;;  %v411_v1 = vld [vmem:[#allocation2 + $0x140] sm:$0xff] }
 0x27c   : > { %v1730_v19 = vadd.f32 %v1608_v31, %v430_v13  ;;  %1794 = vst [vmem:[#allocation2 + $0xd8] sm:$0xff] %v1698_v8  ;;  %v454_v13 = vld [vmem:[#allocation2 + $0x298] sm:$0xff]  ;;  %v451_v8 = vld [vmem:[#allocation2 + $0x280] sm:$0xff] }
 0x27d   : > { %v1727_v20 = vadd.f32 %v1603_v29, %v427_v10  ;;  %1795 = vst [vmem:[#allocation2 + $0xe0] sm:$0xff] %v1699_v16  ;;  %v2331_v24 = vpop.f32.mrb[84].mxu1  ;;  %v1090_v17 = vpop.f32.mrb[20].mxu0  ;;  %v413_v29 = vld [vmem:[#allocation2 + $0x150] sm:$0xff] }
 0x27e   : > { %1826 = vst [vmem:[#allocation2 + $0x1d8] sm:$0xff] %v1730_v19  ;;  %v1618_v34 = vadd.f32 %v2331_v24, %v3640_v38  ;;  %v1701_v26 = vadd.f32 %v1090_v17, %v401_v18  ;;  %v1612_v28 = vpop.f32.mrb[85].mxu1  ;;  %v1092_v30 = vpop.f32.mrb[21].mxu0  ;;  %v414_v18 = vld [vmem:[#allocation2 + $0x158] sm:$0xff]  ;;  %v457_v17 = vld [vmem:[#allocation2 + $0x2b0] sm:$0xff] }
 0x27f   : > { %1823 = vst [vmem:[#allocation2 + $0x1c0] sm:$0xff] %v1727_v20  ;;  %v1613_v4 = vadd.f32 %v1612_v28, %v3638_v36  ;;  %v1702_v32 = vadd.f32 %v1092_v30, %v402_v7  ;;  %v460_v7 = vld [vmem:[#allocation2 + $0x2c8] sm:$0xff] }
 0x280   : > { %v1736_v35 = vadd.f32 %v1618_v34, %v436_v22  ;;  %1797 = vst [vmem:[#allocation2 + $0xf0] sm:$0xff] %v1701_v26  ;;  %v416_v28 = vld [vmem:[#allocation2 + $0x168] sm:$0xff] }
 0x281   : > { %v1733_v23 = vadd.f32 %v1613_v4, %v433_v5  ;;  %1798 = vst [vmem:[#allocation2 + $0xf8] sm:$0xff] %v1702_v32  ;;  %v2334_v39 = vpop.f32.mrb[86].mxu1  ;;  %v1096_v11 = vpop.f32.mrb[22].mxu0  ;;  %v417_v4 = vld [vmem:[#allocation2 + $0x170] sm:$0xff] }
 0x282   : > { %1832 = vst [vmem:[#allocation2 + $0x208] sm:$0xff] %v1736_v35  ;;  %v1628_v38 = vadd.f32 %v2334_v39, %v3644_v42  ;;  %v1704_v41 = vadd.f32 %v1096_v11, %v404_v33  ;;  %v1622_v60 = vpop.f32.mrb[87].mxu1  ;;  %v1098_v43 = vpop.f32.mrb[23].mxu0  ;;  %v466_v33 = vld [vmem:[#allocation2 + $0x2f8] sm:$0xff] }
 0x283   : > { %1829 = vst [vmem:[#allocation2 + $0x1f0] sm:$0xff] %v1733_v23  ;;  %v1623_v36 = vadd.f32 %v1622_v60, %v3642_v40  ;;  %v1705_v45 = vadd.f32 %v1098_v43, %v405_v62  ;;  %v420_v60 = vld [vmem:[#allocation2 + $0x188] sm:$0xff] }
 0x284   : > { %v1742_v47 = vadd.f32 %v1628_v38, %v442_v37  ;;  %1800 = vst [vmem:[#allocation2 + $0x108] sm:$0xff] %v1704_v41  ;;  %v463_v37 = vld [vmem:[#allocation2 + $0x2e0] sm:$0xff] }
 0x285   : > { %v1739_v51 = vadd.f32 %v1623_v36, %v439_v21  ;;  %1801 = vst [vmem:[#allocation2 + $0x110] sm:$0xff] %v1705_v45  ;;  %v2337_v27 = vpop.f32.mrb[88].mxu1  ;;  %v1102_v55 = vpop.f32.mrb[24].mxu0  ;;  %v419_v41 = vld [vmem:[#allocation2 + $0x180] sm:$0xff] }
 0x286   : > { %1838 = vst [vmem:[#allocation2 + $0x238] sm:$0xff] %v1742_v47  ;;  %v1638_v42 = vadd.f32 %v2337_v27, %v3648_v46  ;;  %v1707_v57 = vadd.f32 %v1102_v55, %v407_v9  ;;  %v1632_v59 = vpop.f32.mrb[89].mxu1  ;;  %v1104_v25 = vpop.f32.mrb[25].mxu0  ;;  %v422_v47 = vld [vmem:[#allocation2 + $0x198] sm:$0xff]  ;;  %v425_v55 = vld [vmem:[#allocation2 + $0x1b0] sm:$0xff] }
 0x287   : > { %1835 = vst [vmem:[#allocation2 + $0x220] sm:$0xff] %v1739_v51  ;;  %v1633_v40 = vadd.f32 %v1632_v59, %v3646_v44  ;;  %v1708_v15 = vadd.f32 %v1104_v25, %v408_v49  ;;  %v423_v49 = vld [vmem:[#allocation2 + $0x1a0] sm:$0xff] }
 0x288   : > { %v1748_v63 = vadd.f32 %v1638_v42, %v448_v53  ;;  %1803 = vst [vmem:[#allocation2 + $0x120] sm:$0xff] %v1707_v57  ;;  %v426_v42 = vld [vmem:[#allocation2 + $0x1b8] sm:$0xff] }
 0x289   : > { %v1745_v0 = vadd.f32 %v1633_v40, %v445_v2  ;;  %1804 = vst [vmem:[#allocation2 + $0x128] sm:$0xff] %v1708_v15  ;;  %v2340_v3 = vpop.f32.mrb[90].mxu1  ;;  %v1108_v6 = vpop.f32.mrb[26].mxu0  ;;  %v428_v40 = vld [vmem:[#allocation2 + $0x1c8] sm:$0xff]  ;;  %v429_v15 = vld [vmem:[#allocation2 + $0x1d0] sm:$0xff] }
 0x28a   : > { %1844 = vst [vmem:[#allocation2 + $0x268] sm:$0xff] %v1748_v63  ;;  %v1648_v46 = vadd.f32 %v2340_v3, %v3652_v50  ;;  %v1710_v31 = vadd.f32 %v1108_v6, %v410_v61  ;;  %v1642_v10 = vpop.f32.mrb[91].mxu1  ;;  %v1110_v12 = vpop.f32.mrb[27].mxu0  ;;  %v432_v3 = vld [vmem:[#allocation2 + $0x1e8] sm:$0xff] }
 0x28b   : > { %1841 = vst [vmem:[#allocation2 + $0x250] sm:$0xff] %v1745_v0  ;;  %v1643_v44 = vadd.f32 %v1642_v10, %v3650_v48  ;;  %v1711_v14 = vadd.f32 %v1110_v12, %v411_v1  ;;  %v434_v10 = vld [vmem:[#allocation2 + $0x1f8] sm:$0xff]  ;;  %v435_v12 = vld [vmem:[#allocation2 + $0x200] sm:$0xff] }
 0x28c   : > { %v1754_v16 = vadd.f32 %v1648_v46, %v454_v13  ;;  %1806 = vst [vmem:[#allocation2 + $0x138] sm:$0xff] %v1710_v31  ;;  %v431_v13 = vld [vmem:[#allocation2 + $0x1e0] sm:$0xff] }
 0x28d   : > { %v1751_v19 = vadd.f32 %v1643_v44, %v451_v8  ;;  %1807 = vst [vmem:[#allocation2 + $0x140] sm:$0xff] %v1711_v14  ;;  %v2343_v20 = vpop.f32.mrb[92].mxu1  ;;  %v1114_v22 = vpop.f32.mrb[28].mxu0 }
 0x28e   : > { %1850 = vst [vmem:[#allocation2 + $0x298] sm:$0xff] %v1754_v16  ;;  %v1658_v50 = vadd.f32 %v2343_v20, %v3656_v54  ;;  %v1713_v24 = vadd.f32 %v1114_v22, %v413_v29  ;;  %v1652_v34 = vpop.f32.mrb[93].mxu1  ;;  %v1116_v26 = vpop.f32.mrb[29].mxu0 }
 0x28f   : > { %1847 = vst [vmem:[#allocation2 + $0x280] sm:$0xff] %v1751_v19  ;;  %v1653_v48 = vadd.f32 %v1652_v34, %v3654_v52  ;;  %v1714_v5 = vadd.f32 %v1116_v26, %v414_v18  ;;  %v437_v18 = vld [vmem:[#allocation2 + $0x210] sm:$0xff]  ;;  %v438_v19 = vld [vmem:[#allocation2 + $0x218] sm:$0xff] }
 0x290   : > { %v1760_v30 = vadd.f32 %v1658_v50, %v460_v7  ;;  %1809 = vst [vmem:[#allocation2 + $0x150] sm:$0xff] %v1713_v24  ;;  %v440_v24 = vld [vmem:[#allocation2 + $0x228] sm:$0xff] }
 0x291   : > { %v1757_v32 = vadd.f32 %v1653_v48, %v457_v17  ;;  %1810 = vst [vmem:[#allocation2 + $0x158] sm:$0xff] %v1714_v5  ;;  %v2346_v35 = vpop.f32.mrb[94].mxu1  ;;  %v1120_v62 = vpop.f32.mrb[30].mxu0  ;;  %v441_v17 = vld [vmem:[#allocation2 + $0x230] sm:$0xff] }
 0x292   : > { %1856 = vst [vmem:[#allocation2 + $0x2c8] sm:$0xff] %v1760_v30  ;;  %v1668_v54 = vadd.f32 %v2346_v35, %v3660_v58  ;;  %v1716_v23 = vadd.f32 %v1120_v62, %v416_v28  ;;  %v1662_v39 = vpop.f32.mrb[95].mxu1  ;;  %v1122_v11 = vpop.f32.mrb[31].mxu0  ;;  %v443_v28 = vld [vmem:[#allocation2 + $0x240] sm:$0xff]  ;;  %v444_v30 = vld [vmem:[#allocation2 + $0x248] sm:$0xff]  ;;  %v446_v62 = vld [vmem:[#allocation2 + $0x258] sm:$0xff] }
 0x293   : > { %1853 = vst [vmem:[#allocation2 + $0x2b0] sm:$0xff] %v1757_v32  ;;  %v1663_v52 = vadd.f32 %v1662_v39, %v3658_v56  ;;  %v1717_v38 = vadd.f32 %v1122_v11, %v417_v4 }
 0x294   : > { %v1766_v21 = vadd.f32 %v1668_v54, %v466_v33  ;;  %1812 = vst [vmem:[#allocation2 + $0x168] sm:$0xff] %v1716_v23  ;;  %v447_v54 = vld [vmem:[#allocation2 + $0x260] sm:$0xff] }
 0x295   : > { %v1763_v43 = vadd.f32 %v1663_v52, %v463_v37  ;;  %1813 = vst [vmem:[#allocation2 + $0x170] sm:$0xff] %v1717_v38  ;;  %v1126_v36 = vpop.f32.mrb[32].mxu0  ;;  %v449_v52 = vld [vmem:[#allocation2 + $0x270] sm:$0xff]  ;;  %v450_v38 = vld [vmem:[#allocation2 + $0x278] sm:$0xff] }
 0x296   : > { %1862 = vst [vmem:[#allocation2 + $0x2f8] sm:$0xff] %v1766_v21  ;;  %v1719_v45 = vadd.f32 %v1126_v36, %v419_v41  ;;  %v1128_v9 = vpop.f32.mrb[33].mxu0  ;;  %v452_v36 = vld [vmem:[#allocation2 + $0x288] sm:$0xff] }
 0x297   : > { %1859 = vst [vmem:[#allocation2 + $0x2e0] sm:$0xff] %v1763_v43  ;;  %v1720_v58 = vadd.f32 %v1128_v9, %v420_v60 }
 0x298   : > { %1815 = vst [vmem:[#allocation2 + $0x180] sm:$0xff] %v1719_v45  ;;  %v453_v45 = vld [vmem:[#allocation2 + $0x290] sm:$0xff] }
 0x299   : > { %1816 = vst [vmem:[#allocation2 + $0x188] sm:$0xff] %v1720_v58  ;;  %v1132_v51 = vpop.f32.mrb[34].mxu0 }
 0x29a   : > { %v1722_v53 = vadd.f32 %v1132_v51, %v422_v47  ;;  %v1134_v56 = vpop.f32.mrb[35].mxu0  ;;  %v455_v51 = vld [vmem:[#allocation2 + $0x2a0] sm:$0xff] }
 0x29b   : > { %v1723_v27 = vadd.f32 %v1134_v56, %v423_v49 }
 0x29c   : > { %1818 = vst [vmem:[#allocation2 + $0x198] sm:$0xff] %v1722_v53  ;;  %v456_v53 = vld [vmem:[#allocation2 + $0x2a8] sm:$0xff] }
 0x29d   : > { %1819 = vst [vmem:[#allocation2 + $0x1a0] sm:$0xff] %v1723_v27  ;;  %v1138_v57 = vpop.f32.mrb[36].mxu0 }
 0x29e   : > { %v1725_v2 = vadd.f32 %v1138_v57, %v425_v55  ;;  %v1140_v59 = vpop.f32.mrb[37].mxu0  ;;  %v458_v57 = vld [vmem:[#allocation2 + $0x2b8] sm:$0xff] }
 0x29f   : > { %v1726_v25 = vadd.f32 %v1140_v59, %v426_v42 }
 0x2a0   : > { %1821 = vst [vmem:[#allocation2 + $0x1b0] sm:$0xff] %v1725_v2  ;;  %v459_v2 = vld [vmem:[#allocation2 + $0x2c0] sm:$0xff] }
 0x2a1   : > { %1822 = vst [vmem:[#allocation2 + $0x1b8] sm:$0xff] %v1726_v25  ;;  %v1144_v61 = vpop.f32.mrb[38].mxu0 }
 0x2a2   : > { %v1728_v63 = vadd.f32 %v1144_v61, %v428_v40  ;;  %v1146_v1 = vpop.f32.mrb[39].mxu0  ;;  %v461_v61 = vld [vmem:[#allocation2 + $0x2d0] sm:$0xff] }
 0x2a3   : > { %v1729_v0 = vadd.f32 %v1146_v1, %v429_v15 }
 0x2a4   : > { %1824 = vst [vmem:[#allocation2 + $0x1c8] sm:$0xff] %v1728_v63  ;;  %v462_v63 = vld [vmem:[#allocation2 + $0x2d8] sm:$0xff] }
 0x2a5   : > { %1825 = vst [vmem:[#allocation2 + $0x1d0] sm:$0xff] %v1729_v0  ;;  %v1150_v6 = vpop.f32.mrb[40].mxu0 }
 0x2a6   : > { %v1731_v46 = vadd.f32 %v1150_v6, %v431_v13  ;;  %v1152_v31 = vpop.f32.mrb[41].mxu0  ;;  %v464_v6 = vld [vmem:[#allocation2 + $0x2e8] sm:$0xff] }
 0x2a7   : > { %v1732_v8 = vadd.f32 %v1152_v31, %v432_v3 }
 0x2a8   : > { %1827 = vst [vmem:[#allocation2 + $0x1e0] sm:$0xff] %v1731_v46  ;;  %v465_v46 = vld [vmem:[#allocation2 + $0x2f0] sm:$0xff] }
 0x2a9   : > { %1828 = vst [vmem:[#allocation2 + $0x1e8] sm:$0xff] %v1732_v8  ;;  %v1156_v44 = vpop.f32.mrb[42].mxu0 }
 0x2aa   : > { %v1734_v14 = vadd.f32 %v1156_v44, %v434_v10  ;;  %v1158_v29 = vpop.f32.mrb[43].mxu0 }
 0x2ab   : > { %v1735_v16 = vadd.f32 %v1158_v29, %v435_v12 }
 0x2ac   : > { %1830 = vst [vmem:[#allocation2 + $0x1f8] sm:$0xff] %v1734_v14 }
 0x2ad   : > { %1831 = vst [vmem:[#allocation2 + $0x200] sm:$0xff] %v1735_v16  ;;  %v1162_v7 = vpop.f32.mrb[44].mxu0 }
 0x2ae   : > { %v1737_v20 = vadd.f32 %v1162_v7, %v437_v18  ;;  %v1164_v22 = vpop.f32.mrb[45].mxu0 }
 0x2af   : > { %v1738_v50 = vadd.f32 %v1164_v22, %v438_v19 }
 0x2b0   : > { %1833 = vst [vmem:[#allocation2 + $0x210] sm:$0xff] %v1737_v20 }
 0x2b1   : > { %1834 = vst [vmem:[#allocation2 + $0x218] sm:$0xff] %v1738_v50  ;;  %v1168_v34 = vpop.f32.mrb[46].mxu0 }
 0x2b2   : > { %v1740_v26 = vadd.f32 %v1168_v34, %v440_v24  ;;  %v1170_v48 = vpop.f32.mrb[47].mxu0 }
 0x2b3   : > { %v1741_v5 = vadd.f32 %v1170_v48, %v441_v17 }
 0x2b4   : > { %1836 = vst [vmem:[#allocation2 + $0x228] sm:$0xff] %v1740_v26 }
 0x2b5   : > { %1837 = vst [vmem:[#allocation2 + $0x230] sm:$0xff] %v1741_v5  ;;  %v1174_v4 = vpop.f32.mrb[48].mxu0 }
 0x2b6   : > { %v1743_v32 = vadd.f32 %v1174_v4, %v443_v28  ;;  %v1176_v33 = vpop.f32.mrb[49].mxu0 }
 0x2b7   : > { %v1744_v35 = vadd.f32 %v1176_v33, %v444_v30 }
 0x2b8   : > { %1839 = vst [vmem:[#allocation2 + $0x240] sm:$0xff] %v1743_v32 }
 0x2b9   : > { %1840 = vst [vmem:[#allocation2 + $0x248] sm:$0xff] %v1744_v35  ;;  %v1180_v23 = vpop.f32.mrb[50].mxu0 }
 0x2ba   : > { %v1746_v37 = vadd.f32 %v1180_v23, %v446_v62  ;;  %v1182_v39 = vpop.f32.mrb[51].mxu0 }
 0x2bb   : > { %v1747_v11 = vadd.f32 %v1182_v39, %v447_v54 }
 0x2bc   : > { %1842 = vst [vmem:[#allocation2 + $0x258] sm:$0xff] %v1746_v37 }
 0x2bd   : > { %1843 = vst [vmem:[#allocation2 + $0x260] sm:$0xff] %v1747_v11  ;;  %v1186_v41 = vpop.f32.mrb[52].mxu0 }
 0x2be   : > { %v1749_v21 = vadd.f32 %v1186_v41, %v449_v52  ;;  %v1188_v60 = vpop.f32.mrb[53].mxu0 }
 0x2bf   : > { %v1750_v43 = vadd.f32 %v1188_v60, %v450_v38 }
 0x2c0   : > { %1845 = vst [vmem:[#allocation2 + $0x270] sm:$0xff] %v1749_v21 }
 0x2c1   : > { %1846 = vst [vmem:[#allocation2 + $0x278] sm:$0xff] %v1750_v43  ;;  %v1192_v9 = vpop.f32.mrb[54].mxu0 }
 0x2c2   : > { %v1752_v58 = vadd.f32 %v1192_v9, %v452_v36  ;;  %v1194_v47 = vpop.f32.mrb[55].mxu0 }
 0x2c3   : > { %v1753_v49 = vadd.f32 %v1194_v47, %v453_v45 }
 0x2c4   : > { %1848 = vst [vmem:[#allocation2 + $0x288] sm:$0xff] %v1752_v58 }
 0x2c5   : > { %1849 = vst [vmem:[#allocation2 + $0x290] sm:$0xff] %v1753_v49  ;;  %v1198_v56 = vpop.f32.mrb[56].mxu0 }
 0x2c6   : > { %v1755_v27 = vadd.f32 %v1198_v56, %v455_v51  ;;  %v1200_v55 = vpop.f32.mrb[57].mxu0 }
 0x2c7   : > { %v1756_v42 = vadd.f32 %v1200_v55, %v456_v53 }
 0x2c8   : > { %1851 = vst [vmem:[#allocation2 + $0x2a0] sm:$0xff] %v1755_v27 }
 0x2c9   : > { %1852 = vst [vmem:[#allocation2 + $0x2a8] sm:$0xff] %v1756_v42  ;;  %v1204_v59 = vpop.f32.mrb[58].mxu0 }
 0x2ca   : > { %v1758_v25 = vadd.f32 %v1204_v59, %v458_v57  ;;  %v1206_v40 = vpop.f32.mrb[59].mxu0 }
 0x2cb   : > { %v1759_v15 = vadd.f32 %v1206_v40, %v459_v2 }
 0x2cc   : > { %1854 = vst [vmem:[#allocation2 + $0x2b8] sm:$0xff] %v1758_v25 }
 0x2cd   : > { %1855 = vst [vmem:[#allocation2 + $0x2c0] sm:$0xff] %v1759_v15  ;;  %v1210_v1 = vpop.f32.mrb[60].mxu0 }
 0x2ce   : > { %v1761_v0 = vadd.f32 %v1210_v1, %v461_v61  ;;  %v1212_v13 = vpop.f32.mrb[61].mxu0 }
 0x2cf   : > { %v1762_v3 = vadd.f32 %v1212_v13, %v462_v63 }
 0x2d0   : > { %1857 = vst [vmem:[#allocation2 + $0x2d0] sm:$0xff] %v1761_v0 }
 0x2d1   : > { %1858 = vst [vmem:[#allocation2 + $0x2d8] sm:$0xff] %v1762_v3  ;;  %v1216_v31 = vpop.f32.mrb[62].mxu0 }
 0x2d2   : > { %v1764_v8 = vadd.f32 %v1216_v31, %v464_v6  ;;  %v1218_v10 = vpop.f32.mrb[63].mxu0 }
 0x2d3   : > { %v1765_v12 = vadd.f32 %v1218_v10, %v465_v46 }
 0x2d4   : > { %1860 = vst [vmem:[#allocation2 + $0x2e8] sm:$0xff] %v1764_v8 }
 0x2d5   : > { %1861 = vst [vmem:[#allocation2 + $0x2f0] sm:$0xff] %v1765_v12 }
 0x2d6 PF: > { %s3936_s5 = sld [smem:[#allocation15_spill]] }
 0x2dc   : > { %p2212_p8 = scmp.lt.s32.totalorder %s3936_s5, 0 }
 0x2dd   : > { %v1867_v44 = vld [vmem:[#allocation2] sm:$0xff] (!%p2212_p8)  ;;  %v1868_v14 = vld [vmem:[#allocation2 + $0x8] sm:$0xff] (!%p2212_p8)  ;;  %v1869_v29 = vld [vmem:[#allocation2 + $0x10] sm:$0xff] (!%p2212_p8) }
 0x2de   : > { %1866 = sbr.rel (%p2212_p8) target bundleno = 782 (0x30e), region = 48  ;;  %1963 = vst [vmem:[%s3210_s3] sm:$0xff] (!%p2212_p8), %v1867_v44  ;;  %1964 = vst [vmem:[%s3210_s3 + $0x8] sm:$0xff] (!%p2212_p8), %v1868_v14  ;;  %v1870_v16 = vld [vmem:[#allocation2 + $0x18] sm:$0xff] (!%p2212_p8)  ;;  %v1871_v18 = vld [vmem:[#allocation2 + $0x20] sm:$0xff] (!%p2212_p8) }
 0x2df   : > { %1965 = vst [vmem:[%s3210_s3 + $0x10] sm:$0xff] (!%p2212_p8), %v1869_v29  ;;  %v1872_v19 = vld [vmem:[#allocation2 + $0x28] sm:$0xff] (!%p2212_p8)  ;;  %1966 = vst [vmem:[%s3210_s3 + $0x18] sm:$0xff] (!%p2212_p8), %v1870_v16  ;;  %v1873_v7 = vld [vmem:[#allocation2 + $0x30] sm:$0xff] (!%p2212_p8) }
 0x2e0   : > { %1967 = vst [vmem:[%s3210_s3 + $0x20] sm:$0xff] (!%p2212_p8), %v1871_v18  ;;  %1968 = vst [vmem:[%s3210_s3 + $0x28] sm:$0xff] (!%p2212_p8), %v1872_v19  ;;  %v1874_v20 = vld [vmem:[#allocation2 + $0x38] sm:$0xff] (!%p2212_p8)  ;;  %v1875_v22 = vld [vmem:[#allocation2 + $0x40] sm:$0xff] (!%p2212_p8) }
 0x2e1   : > { %1969 = vst [vmem:[%s3210_s3 + $0x30] sm:$0xff] (!%p2212_p8), %v1873_v7  ;;  %1970 = vst [vmem:[%s3210_s3 + $0x38] sm:$0xff] (!%p2212_p8), %v1874_v20  ;;  %v1876_v50 = vld [vmem:[#allocation2 + $0x48] sm:$0xff] (!%p2212_p8)  ;;  %v1877_v24 = vld [vmem:[#allocation2 + $0x50] sm:$0xff] (!%p2212_p8) }
 0x2e2   : > { %1971 = vst [vmem:[%s3210_s3 + $0x40] sm:$0xff] (!%p2212_p8), %v1875_v22  ;;  %v1878_v17 = vld [vmem:[#allocation2 + $0x58] sm:$0xff] (!%p2212_p8)  ;;  %1972 = vst [vmem:[%s3210_s3 + $0x48] sm:$0xff] (!%p2212_p8), %v1876_v50  ;;  %v1879_v34 = vld [vmem:[#allocation2 + $0x60] sm:$0xff] (!%p2212_p8) }
 0x2e3   : > { %1973 = vst [vmem:[%s3210_s3 + $0x50] sm:$0xff] (!%p2212_p8), %v1877_v24  ;;  %1974 = vst [vmem:[%s3210_s3 + $0x58] sm:$0xff] (!%p2212_p8), %v1878_v17  ;;  %v1880_v26 = vld [vmem:[#allocation2 + $0x68] sm:$0xff] (!%p2212_p8)  ;;  %v1881_v48 = vld [vmem:[#allocation2 + $0x70] sm:$0xff] (!%p2212_p8) }
 0x2e4   : > { %1975 = vst [vmem:[%s3210_s3 + $0x60] sm:$0xff] (!%p2212_p8), %v1879_v34  ;;  %1976 = vst [vmem:[%s3210_s3 + $0x68] sm:$0xff] (!%p2212_p8), %v1880_v26  ;;  %v1882_v5 = vld [vmem:[#allocation2 + $0x78] sm:$0xff] (!%p2212_p8)  ;;  %v1883_v28 = vld [vmem:[#allocation2 + $0x80] sm:$0xff] (!%p2212_p8) }
 0x2e5   : > { %1977 = vst [vmem:[%s3210_s3 + $0x70] sm:$0xff] %v1881_v48  ;;  %v1884_v30 = vld [vmem:[#allocation2 + $0x88] sm:$0xff]  ;;  %1978 = vst [vmem:[%s3210_s3 + $0x78] sm:$0xff] %v1882_v5  ;;  %v1885_v4 = vld [vmem:[#allocation2 + $0x90] sm:$0xff] }
 0x2e6   : > { %1979 = vst [vmem:[%s3210_s3 + $0x80] sm:$0xff] %v1883_v28  ;;  %1980 = vst [vmem:[%s3210_s3 + $0x88] sm:$0xff] %v1884_v30  ;;  %v1886_v32 = vld [vmem:[#allocation2 + $0x98] sm:$0xff]  ;;  %v1887_v33 = vld [vmem:[#allocation2 + $0xa0] sm:$0xff] }
 0x2e7   : > { %1981 = vst [vmem:[%s3210_s3 + $0x90] sm:$0xff] %v1885_v4  ;;  %1982 = vst [vmem:[%s3210_s3 + $0x98] sm:$0xff] %v1886_v32  ;;  %v1888_v35 = vld [vmem:[#allocation2 + $0xa8] sm:$0xff]  ;;  %v1889_v62 = vld [vmem:[#allocation2 + $0xb0] sm:$0xff] }
 0x2e8   : > { %1983 = vst [vmem:[%s3210_s3 + $0xa0] sm:$0xff] %v1887_v33  ;;  %v1890_v54 = vld [vmem:[#allocation2 + $0xb8] sm:$0xff]  ;;  %1984 = vst [vmem:[%s3210_s3 + $0xa8] sm:$0xff] %v1888_v35  ;;  %v1891_v23 = vld [vmem:[#allocation2 + $0xc0] sm:$0xff] }
 0x2e9   : > { %1985 = vst [vmem:[%s3210_s3 + $0xb0] sm:$0xff] %v1889_v62  ;;  %1986 = vst [vmem:[%s3210_s3 + $0xb8] sm:$0xff] %v1890_v54  ;;  %v1892_v37 = vld [vmem:[#allocation2 + $0xc8] sm:$0xff]  ;;  %v1893_v39 = vld [vmem:[#allocation2 + $0xd0] sm:$0xff] }
 0x2ea   : > { %1987 = vst [vmem:[%s3210_s3 + $0xc0] sm:$0xff] %v1891_v23  ;;  %1988 = vst [vmem:[%s3210_s3 + $0xc8] sm:$0xff] %v1892_v37  ;;  %v1894_v11 = vld [vmem:[#allocation2 + $0xd8] sm:$0xff]  ;;  %v1895_v52 = vld [vmem:[#allocation2 + $0xe0] sm:$0xff] }
 0x2eb   : > { %1989 = vst [vmem:[%s3210_s3 + $0xd0] sm:$0xff] %v1893_v39  ;;  %v1896_v38 = vld [vmem:[#allocation2 + $0xe8] sm:$0xff]  ;;  %1990 = vst [vmem:[%s3210_s3 + $0xd8] sm:$0xff] %v1894_v11  ;;  %v1897_v41 = vld [vmem:[#allocation2 + $0xf0] sm:$0xff] }
 0x2ec   : > { %1991 = vst [vmem:[%s3210_s3 + $0xe0] sm:$0xff] %v1895_v52  ;;  %1992 = vst [vmem:[%s3210_s3 + $0xe8] sm:$0xff] %v1896_v38  ;;  %v1898_v21 = vld [vmem:[#allocation2 + $0xf8] sm:$0xff]  ;;  %v1899_v60 = vld [vmem:[#allocation2 + $0x100] sm:$0xff] }
 0x2ed   : > { %1993 = vst [vmem:[%s3210_s3 + $0xf0] sm:$0xff] %v1897_v41  ;;  %1994 = vst [vmem:[%s3210_s3 + $0xf8] sm:$0xff] %v1898_v21  ;;  %v1900_v43 = vld [vmem:[#allocation2 + $0x108] sm:$0xff]  ;;  %v1901_v36 = vld [vmem:[#allocation2 + $0x110] sm:$0xff] }
 0x2ee   : > { %1995 = vst [vmem:[%s3210_s3 + $0x100] sm:$0xff] %v1899_v60  ;;  %v1902_v45 = vld [vmem:[#allocation2 + $0x118] sm:$0xff]  ;;  %1996 = vst [vmem:[%s3210_s3 + $0x108] sm:$0xff] %v1900_v43  ;;  %v1903_v9 = vld [vmem:[#allocation2 + $0x120] sm:$0xff] }
 0x2ef   : > { %1997 = vst [vmem:[%s3210_s3 + $0x110] sm:$0xff] %v1901_v36  ;;  %1998 = vst [vmem:[%s3210_s3 + $0x118] sm:$0xff] %v1902_v45  ;;  %v1904_v58 = vld [vmem:[#allocation2 + $0x128] sm:$0xff]  ;;  %v1905_v47 = vld [vmem:[#allocation2 + $0x130] sm:$0xff] }
 0x2f0   : > { %1999 = vst [vmem:[%s3210_s3 + $0x120] sm:$0xff] %v1903_v9  ;;  %2000 = vst [vmem:[%s3210_s3 + $0x128] sm:$0xff] %v1904_v58  ;;  %v1906_v49 = vld [vmem:[#allocation2 + $0x138] sm:$0xff]  ;;  %v1907_v51 = vld [vmem:[#allocation2 + $0x140] sm:$0xff] }
 0x2f1   : > { %2001 = vst [vmem:[%s3210_s3 + $0x130] sm:$0xff] %v1905_v47  ;;  %v1908_v53 = vld [vmem:[#allocation2 + $0x148] sm:$0xff]  ;;  %2002 = vst [vmem:[%s3210_s3 + $0x138] sm:$0xff] %v1906_v49  ;;  %v1909_v56 = vld [vmem:[#allocation2 + $0x150] sm:$0xff] }
 0x2f2   : > { %2003 = vst [vmem:[%s3210_s3 + $0x140] sm:$0xff] %v1907_v51  ;;  %2004 = vst [vmem:[%s3210_s3 + $0x148] sm:$0xff] %v1908_v53  ;;  %v1910_v27 = vld [vmem:[#allocation2 + $0x158] sm:$0xff]  ;;  %v1911_v55 = vld [vmem:[#allocation2 + $0x160] sm:$0xff] }
 0x2f3   : > { %2005 = vst [vmem:[%s3210_s3 + $0x150] sm:$0xff] %v1909_v56  ;;  %2006 = vst [vmem:[%s3210_s3 + $0x158] sm:$0xff] %v1910_v27  ;;  %v1912_v42 = vld [vmem:[#allocation2 + $0x168] sm:$0xff]  ;;  %v1913_v57 = vld [vmem:[#allocation2 + $0x170] sm:$0xff] }
 0x2f4   : > { %2007 = vst [vmem:[%s3210_s3 + $0x160] sm:$0xff] %v1911_v55  ;;  %v1914_v2 = vld [vmem:[#allocation2 + $0x178] sm:$0xff]  ;;  %2008 = vst [vmem:[%s3210_s3 + $0x168] sm:$0xff] %v1912_v42  ;;  %v1915_v59 = vld [vmem:[#allocation2 + $0x180] sm:$0xff] }
 0x2f5   : > { %2009 = vst [vmem:[%s3210_s3 + $0x170] sm:$0xff] %v1913_v57  ;;  %2010 = vst [vmem:[%s3210_s3 + $0x178] sm:$0xff] %v1914_v2  ;;  %v1916_v25 = vld [vmem:[#allocation2 + $0x188] sm:$0xff]  ;;  %v1917_v40 = vld [vmem:[#allocation2 + $0x190] sm:$0xff] }
 0x2f6   : > { %2011 = vst [vmem:[%s3210_s3 + $0x180] sm:$0xff] %v1915_v59  ;;  %2012 = vst [vmem:[%s3210_s3 + $0x188] sm:$0xff] %v1916_v25  ;;  %v1918_v15 = vld [vmem:[#allocation2 + $0x198] sm:$0xff]  ;;  %v1919_v61 = vld [vmem:[#allocation2 + $0x1a0] sm:$0xff] }
 0x2f7   : > { %2013 = vst [vmem:[%s3210_s3 + $0x190] sm:$0xff] %v1917_v40  ;;  %v1920_v63 = vld [vmem:[#allocation2 + $0x1a8] sm:$0xff]  ;;  %2014 = vst [vmem:[%s3210_s3 + $0x198] sm:$0xff] %v1918_v15  ;;  %v1921_v1 = vld [vmem:[#allocation2 + $0x1b0] sm:$0xff] }
 0x2f8   : > { %2015 = vst [vmem:[%s3210_s3 + $0x1a0] sm:$0xff] %v1919_v61  ;;  %2016 = vst [vmem:[%s3210_s3 + $0x1a8] sm:$0xff] %v1920_v63  ;;  %v1922_v0 = vld [vmem:[#allocation2 + $0x1b8] sm:$0xff]  ;;  %v1923_v13 = vld [vmem:[#allocation2 + $0x1c0] sm:$0xff] }
 0x2f9   : > { %2017 = vst [vmem:[%s3210_s3 + $0x1b0] sm:$0xff] %v1921_v1  ;;  %2018 = vst [vmem:[%s3210_s3 + $0x1b8] sm:$0xff] %v1922_v0  ;;  %v1924_v3 = vld [vmem:[#allocation2 + $0x1c8] sm:$0xff]  ;;  %v1925_v6 = vld [vmem:[#allocation2 + $0x1d0] sm:$0xff] }
 0x2fa   : > { %2019 = vst [vmem:[%s3210_s3 + $0x1c0] sm:$0xff] %v1923_v13  ;;  %v1926_v46 = vld [vmem:[#allocation2 + $0x1d8] sm:$0xff]  ;;  %2020 = vst [vmem:[%s3210_s3 + $0x1c8] sm:$0xff] %v1924_v3  ;;  %v1927_v31 = vld [vmem:[#allocation2 + $0x1e0] sm:$0xff] }
 0x2fb   : > { %2021 = vst [vmem:[%s3210_s3 + $0x1d0] sm:$0xff] %v1925_v6  ;;  %2022 = vst [vmem:[%s3210_s3 + $0x1d8] sm:$0xff] %v1926_v46  ;;  %v1928_v8 = vld [vmem:[#allocation2 + $0x1e8] sm:$0xff]  ;;  %v1929_v10 = vld [vmem:[#allocation2 + $0x1f0] sm:$0xff] }
 0x2fc   : > { %2023 = vst [vmem:[%s3210_s3 + $0x1e0] sm:$0xff] %v1927_v31  ;;  %2024 = vst [vmem:[%s3210_s3 + $0x1e8] sm:$0xff] %v1928_v8  ;;  %v1930_v12 = vld [vmem:[#allocation2 + $0x1f8] sm:$0xff]  ;;  %v1931_v44 = vld [vmem:[#allocation2 + $0x200] sm:$0xff] }
 0x2fd   : > { %2025 = vst [vmem:[%s3210_s3 + $0x1f0] sm:$0xff] %v1929_v10  ;;  %v1932_v14 = vld [vmem:[#allocation2 + $0x208] sm:$0xff]  ;;  %2026 = vst [vmem:[%s3210_s3 + $0x1f8] sm:$0xff] %v1930_v12  ;;  %v1933_v29 = vld [vmem:[#allocation2 + $0x210] sm:$0xff] }
 0x2fe   : > { %2027 = vst [vmem:[%s3210_s3 + $0x200] sm:$0xff] %v1931_v44  ;;  %2028 = vst [vmem:[%s3210_s3 + $0x208] sm:$0xff] %v1932_v14  ;;  %v1934_v16 = vld [vmem:[#allocation2 + $0x218] sm:$0xff]  ;;  %v1935_v18 = vld [vmem:[#allocation2 + $0x220] sm:$0xff] }
 0x2ff   : > { %2029 = vst [vmem:[%s3210_s3 + $0x210] sm:$0xff] %v1933_v29  ;;  %2030 = vst [vmem:[%s3210_s3 + $0x218] sm:$0xff] %v1934_v16  ;;  %v1936_v19 = vld [vmem:[#allocation2 + $0x228] sm:$0xff]  ;;  %v1937_v7 = vld [vmem:[#allocation2 + $0x230] sm:$0xff] }
 0x300   : > { %2031 = vst [vmem:[%s3210_s3 + $0x220] sm:$0xff] %v1935_v18  ;;  %v1938_v20 = vld [vmem:[#allocation2 + $0x238] sm:$0xff]  ;;  %2032 = vst [vmem:[%s3210_s3 + $0x228] sm:$0xff] %v1936_v19  ;;  %v1939_v22 = vld [vmem:[#allocation2 + $0x240] sm:$0xff] }
 0x301   : > { %2033 = vst [vmem:[%s3210_s3 + $0x230] sm:$0xff] %v1937_v7  ;;  %2034 = vst [vmem:[%s3210_s3 + $0x238] sm:$0xff] %v1938_v20  ;;  %v1940_v50 = vld [vmem:[#allocation2 + $0x248] sm:$0xff]  ;;  %v1941_v24 = vld [vmem:[#allocation2 + $0x250] sm:$0xff] }
 0x302   : > { %2035 = vst [vmem:[%s3210_s3 + $0x240] sm:$0xff] %v1939_v22  ;;  %2036 = vst [vmem:[%s3210_s3 + $0x248] sm:$0xff] %v1940_v50  ;;  %v1942_v17 = vld [vmem:[#allocation2 + $0x258] sm:$0xff]  ;;  %v1943_v34 = vld [vmem:[#allocation2 + $0x260] sm:$0xff] }
 0x303   : > { %2037 = vst [vmem:[%s3210_s3 + $0x250] sm:$0xff] %v1941_v24  ;;  %v1944_v26 = vld [vmem:[#allocation2 + $0x268] sm:$0xff]  ;;  %2038 = vst [vmem:[%s3210_s3 + $0x258] sm:$0xff] %v1942_v17  ;;  %v1945_v48 = vld [vmem:[#allocation2 + $0x270] sm:$0xff] }
 0x304   : > { %2039 = vst [vmem:[%s3210_s3 + $0x260] sm:$0xff] %v1943_v34  ;;  %2040 = vst [vmem:[%s3210_s3 + $0x268] sm:$0xff] %v1944_v26  ;;  %v1946_v5 = vld [vmem:[#allocation2 + $0x278] sm:$0xff]  ;;  %v1947_v28 = vld [vmem:[#allocation2 + $0x280] sm:$0xff] }
 0x305   : > { %2041 = vst [vmem:[%s3210_s3 + $0x270] sm:$0xff] %v1945_v48  ;;  %2042 = vst [vmem:[%s3210_s3 + $0x278] sm:$0xff] %v1946_v5  ;;  %v1948_v30 = vld [vmem:[#allocation2 + $0x288] sm:$0xff]  ;;  %v1949_v4 = vld [vmem:[#allocation2 + $0x290] sm:$0xff] }
 0x306   : > { %2043 = vst [vmem:[%s3210_s3 + $0x280] sm:$0xff] %v1947_v28  ;;  %v1950_v32 = vld [vmem:[#allocation2 + $0x298] sm:$0xff]  ;;  %2044 = vst [vmem:[%s3210_s3 + $0x288] sm:$0xff] %v1948_v30  ;;  %v1951_v33 = vld [vmem:[#allocation2 + $0x2a0] sm:$0xff] }
 0x307   : > { %2045 = vst [vmem:[%s3210_s3 + $0x290] sm:$0xff] %v1949_v4  ;;  %2046 = vst [vmem:[%s3210_s3 + $0x298] sm:$0xff] %v1950_v32  ;;  %v1952_v35 = vld [vmem:[#allocation2 + $0x2a8] sm:$0xff]  ;;  %v1953_v62 = vld [vmem:[#allocation2 + $0x2b0] sm:$0xff] }
 0x308   : > { %2047 = vst [vmem:[%s3210_s3 + $0x2a0] sm:$0xff] %v1951_v33  ;;  %2048 = vst [vmem:[%s3210_s3 + $0x2a8] sm:$0xff] %v1952_v35  ;;  %v1954_v54 = vld [vmem:[#allocation2 + $0x2b8] sm:$0xff]  ;;  %v1955_v23 = vld [vmem:[#allocation2 + $0x2c0] sm:$0xff] }
 0x309   : > { %2049 = vst [vmem:[%s3210_s3 + $0x2b0] sm:$0xff] %v1953_v62  ;;  %v1956_v37 = vld [vmem:[#allocation2 + $0x2c8] sm:$0xff]  ;;  %2050 = vst [vmem:[%s3210_s3 + $0x2b8] sm:$0xff] %v1954_v54  ;;  %v1957_v39 = vld [vmem:[#allocation2 + $0x2d0] sm:$0xff] }
 0x30a   : > { %2051 = vst [vmem:[%s3210_s3 + $0x2c0] sm:$0xff] %v1955_v23  ;;  %2052 = vst [vmem:[%s3210_s3 + $0x2c8] sm:$0xff] %v1956_v37  ;;  %v1958_v11 = vld [vmem:[#allocation2 + $0x2d8] sm:$0xff]  ;;  %v1959_v52 = vld [vmem:[#allocation2 + $0x2e0] sm:$0xff] }
 0x30b   : > { %2053 = vst [vmem:[%s3210_s3 + $0x2d0] sm:$0xff] %v1957_v39  ;;  %2054 = vst [vmem:[%s3210_s3 + $0x2d8] sm:$0xff] %v1958_v11  ;;  %v1960_v38 = vld [vmem:[#allocation2 + $0x2e8] sm:$0xff]  ;;  %v1961_v41 = vld [vmem:[#allocation2 + $0x2f0] sm:$0xff] }
 0x30c   : > { %2055 = vst [vmem:[%s3210_s3 + $0x2e0] sm:$0xff] %v1959_v52  ;;  %v1962_v21 = vld [vmem:[#allocation2 + $0x2f8] sm:$0xff]  ;;  %2056 = vst [vmem:[%s3210_s3 + $0x2e8] sm:$0xff] %v1960_v38 }
 0x30d   : > { %2057 = vst [vmem:[%s3210_s3 + $0x2f0] sm:$0xff] %v1961_v41  ;;  %2058 = vst [vmem:[%s3210_s3 + $0x2f8] sm:$0xff] %v1962_v21 }
 0x30e PF: > { %s3937_s8 = sld [smem:[#allocation15_spill]]  ;;  %s3938_s12 = sld [smem:[#allocation16_spill]] }
 0x30f   : > { %s3940_s26 = sld [smem:[#allocation17_spill]]  ;;  %s2080_s9 = sshll.u32 %s3210_s3, 4  ;;  %s3794_s9 = int_to_ptr.vmem [resolvable:$true] %s2080_s9 }
 0x310   : > { %s3941_s4 = sld [smem:[#allocation21_spill]]  ;;  %s3804_s18 = scalar_lea.sflag [#allocation5], %s250_s2 }
 0x311   : > { %s2794_s22 = scalar_lea.vmem %s3794_s9, 12288  ;;  %s2952_s30 = smov [#allocation8]  }
 0x312   : > { %p2795_p0 = scmp.ne.s32.totalorder %s3794_s9, %s2794_s22  ;;  %s2798_s3 = sshll.u32 %s2952_s30, 4  ;;  %s2799_s3 = int_to_ptr.vmem [resolvable:$false] %s2798_s3 }
 0x313   : > { %s2800_s27 = scalar_lea.vmem %s2799_s3, 24576  ;;  %p2801_p1 = scmp.lt.s32.totalorder %s3794_s9, %s2799_s3 }
 0x314   : > { %p2067_p3 = scmp.gt.s32.totalorder %s3937_s8, 0  ;;  %p2802_p9 = scmp.lt.s32.totalorder %s2800_s27, %s2794_s22 }
 0x315   : > { %p3942_p2 = scmp.ne.s32.totalorder %s3940_s26, 0 }
 0x316   : > { %s3965_s8 = smov (!%p2067_p3, %s3937_s8), 0  ;;  %p2803_p10 = por %p2802_p9, %p2801_p1 }
 0x317   : > { %s2213_s10 = sshll.u32 %s3965_s8, 1  ;;  %p2796_p4 = pnand %p2795_p0, %p3942_p2 }
 0x318   : > { %s2070_s17 = sadd.s32 %s3938_s12, %s2213_s10 }
 0x319   : > { %s2218_s7 = smul.u32 384, %s2070_s17  ;;  %p2797_p11 = pneg %p2796_p4 }
 0x31b   : > { %s3800_s13 = scalar_lea.hbm %s3941_s4, %s2218_s7  ;;  %p2804_p12 = pnand %p2803_p10, %p2797_p11 }
 0x31d   : > { %2807 = shalt.err (!%p2804_p12)
}
 0x31e   : > { %s2808_s2 = scalar_lea.hbm %s3800_s13, 12288  ;;  %s2812_s8 = scalar_lea.hbm %s3941_s4, 73728 }
 0x31f   : > { %p2809_p5 = scmp.ne.s32.totalorder %s3800_s13, %s2808_s2  ;;  %p2813_p13 = scmp.lt.u32.totalorder %s3800_s13, %s3941_s4 }
 0x320   : > { %p2814_p8 = scmp.lt.u32.totalorder %s2812_s8, %s2808_s2  ;;  %p2816_p0 = scmp.lt.u32.totalorder %s2808_s2, %s3800_s13 }
 0x321   : > { %p2810_p6 = pnand %p2809_p5, %p3942_p2 }
 0x322   : > { %p2815_p3 = por %p2814_p8, %p2813_p13 }
 0x323   : > { %p2811_p7 = pneg %p2810_p6 }
 0x324   : > { %p2817_p4 = por %p2816_p0, %p2815_p3 }
 0x326   : > { %p2818_p11 = pnand %p2817_p4, %p2811_p7 }
 0x328   : > { %2821 = shalt.err (!%p2818_p11)
}
 0x329   : > { %s2953_s10 = smov 384   ;;  %s2954_s17 = smov 2304  }
 0x32a   : > { %s2955_s7 = smov 24  }
 0x32b   : > { %2597 = dma.vmem_to_hbm [thread:$0]  (%p3942_p2), %s3794_s9, 12288, %s3800_s13, %s3804_s18, %s2953_s10, %s2954_s17, %s2955_s7  }
 0x32c PF: > { %s3943_s28 = sld [smem:[#allocation12_spill]]  ;;  %s3944_s29 = sld [smem:[#allocation18_spill]] }
 0x32d   : > { %p2612_p1 = scmp.ge.s32.totalorder %s2942_s21, 2 }
 0x332   : > { %s2095_s22 = sand.u32 1, %s3943_s28   ;;  %p3945_p9 = scmp.ne.s32.totalorder %s3944_s29, 0 }
 0x333   : > { %s2096_s30 = scalar_lea.sflag [#allocation5], %s2095_s22 }
 0x334   : > { %p2607_p10 = pnand %p2612_p1, %p3945_p9 }
 0x336   : > { %2887 = dma.done.wait (!%p2607_p10), %s2096_s30, 12288  }
 0x337   : > { %2889 = vsyncadd (!%p2607_p10), %s2096_s30, 4294955008  ;;  %s21_s21 = sadd.s32 1, %s2942_s21   ;;  %s3947_s9 = sld [smem:[#allocation13_spill]] }
 0x338   : > { %p3833_p12 = scmp.ge.s32.totalorder %s21_s21, 8   ;;  %s3948_s12 = sld [smem:[#allocation14_spill]] }
 0x339   : > { %s3949_s10 = smov %s2902_s11  ;;  %s3950_s11 = smov %s3159_s0 }
 0x33a   : > { %s3951_s13 = smov %s2914_s14  ;;  %s3952_s14 = smov %s3137_s6 }
 0x33b   : > { %s3953_s15 = smov %s2922_s16  ;;  %s3858_s16 = smov 0  }
 0x33c   : > { %s3954_s17 = smov %s2934_s19  ;;  %s3955_s18 = smov %s2938_s20 }
 0x33d   : > { %s3956_s19 = smov %s3959_s23  ;;  %s3957_s20 = smov %s3963_s24 }
 0x33e   :  { %20 = sbr.rel (!%p3833_p12) target bundleno = 15 (0xf), region = 98 }
 0x345   :  { %2101 = vsyncpa [#allocation4], 1 }
 0x346   :  { %2103 = vsyncpa [#allocation4 + $0x1], 1 }
 0x347   :  { %2104 = vsyncpa [#allocation7], 1 }
 0x348   :  { %2106 = vsyncpa [#allocation7 + $0x1], 1 }
 0x349   :  { %2107 = vsyncpa [#allocation5], 1 }
 0x34a   :  { %2109 = vsyncpa [#allocation5 + $0x1], 1 }

</bundles_post_ra>
